<compile_context>
chip_gen: v7x
topology: tpu7x:2x2x1
jax: 0.10.0
libtpu: 0.0.40
codegen_flags: <defaults>
</compile_context>

<pallas_src>
import numpy as np
import jax
import jax.numpy as jnp
from jax.experimental import pallas as pl
from jax.experimental.pallas import tpu as pltpu


def _make_kernel(H, WP, PAD, B):
    """Build the SKConv kernel for fixed spatial geometry.

    H   : output height
    WP  : padded width  (W + 2*PAD)
    PAD : spatial padding == max dilation == number of branches
    B   : number of branches
    """
    HWP = H * WP  # flat spatial extent we compute per image (valid + junk pad cols)

    def kernel(xf_ref, wim_ref, mask_ref, bns_ref, bnb_ref,
               fcw_ref, fcsc_ref, fcbi_ref, fcsw_ref, fcsb_ref,
               o_ref, u_ref):
        # ---- per-branch grouped dilated 3x3 conv as ONE im2col matmul -------
        for b in range(B):
            d = b + 1                                  # dilation of branch b
            taps = []
            for ky in range(3):
                for kx in range(3):
                    # constant flat offset for this tap (rows of width WP)
                    off = (PAD + (ky - 1) * d) * WP + PAD + (kx - 1) * d
                    taps.append(xf_ref[0, :, off:off + HWP])       # (C, HWP)
            slab = jnp.concatenate(taps, axis=0).astype(jnp.bfloat16)  # (9C, HWP)
            y = jnp.dot(wim_ref[b], slab,
                        preferred_element_type=jnp.float32)        # (C, HWP) f32
            # BatchNorm (eval mode, folded) + ReLU
            u_ref[b] = jnp.maximum(y * bns_ref[b] + bnb_ref[b], 0.0)

        # ---- branch sum + masked global average pool -------------------------
        s = u_ref[0]
        for b in range(1, B):
            s = s + u_ref[b]
        # mask is 1/(H*W) on valid columns, 0 on the WP-W junk pad columns
        gap = jnp.sum(s * mask_ref[...], axis=1, keepdims=True)     # (C, 1)

        # ---- fc: 1x1 conv C->L (no bias) + BN + ReLU -------------------------
        z = jnp.dot(fcw_ref[...], gap,
                    preferred_element_type=jnp.float32)             # (L, 1)
        z = jnp.maximum(z * fcsc_ref[...] + fcbi_ref[...], 0.0)

        # ---- per-branch 1x1 conv L->C (with bias) + softmax over branches ----
        logits = []
        for b in range(B):
            lb = jnp.dot(fcsw_ref[b], z,
                         preferred_element_type=jnp.float32)        # (C, 1)
            logits.append(lb + fcsb_ref[b])
        m = logits[0]
        for b in range(1, B):
            m = jnp.maximum(m, logits[b])
        exps = [jnp.exp(l - m) for l in logits]
        denom = exps[0]
        for b in range(1, B):
            denom = denom + exps[b]
        inv = pl.reciprocal(denom, approx=True)                     # EUP slot

        # ---- attention-weighted sum of branch features (lane-dense store) ----
        out = u_ref[0] * (exps[0] * inv)
        for b in range(1, B):
            out = out + u_ref[b] * (exps[b] * inv)
        o_ref[0] = out.astype(o_ref.dtype)

    return kernel


def skconv_forward(x_nchw, params):
    """x_nchw: (N, C, H, W) float32 -> (N, C, H, W) float32."""
    N, C, H, W = x_nchw.shape
    w_im = params["w_im"]                        # (B, C, 9C) bf16
    B = w_im.shape[0]
    L = params["fc_w"].shape[0]
    PAD = B                                      # max dilation (branch i has dilation i+1)
    HP, WP = H + 2 * PAD, W + 2 * PAD
    HWP = H * WP
    FLAT = HP * WP + 2 * PAD                     # flat length incl. slack for tap shifts

    # Pad spatially (stays NCHW), flatten (H,W) onto one lane axis, add slack.
    xp = jnp.pad(x_nchw, ((0, 0), (0, 0), (PAD, PAD), (PAD, PAD)))
    xf = jnp.pad(xp.reshape(N, C, HP * WP), ((0, 0), (0, 0), (0, 2 * PAD)))

    # GAP mask: 1/(H*W) at valid flat columns, 0 at the junk pad columns.
    col = np.arange(HWP) % WP
    mask = ((col < W).astype(np.float32) / float(H * W))[None, :]   # (1, HWP)
    mask = jnp.asarray(mask)

    kernel = _make_kernel(H, WP, PAD, B)
    out_flat = pl.pallas_call(
        kernel,
        out_shape=jax.ShapeDtypeStruct((N, C, HWP), jnp.float32),
        grid_spec=pltpu.PrefetchScalarGridSpec(
            num_scalar_prefetch=0,
            grid=(N,),
            in_specs=[
                pl.BlockSpec((1, C, FLAT), lambda n: (n, 0, 0)),    # flat padded image
                pl.BlockSpec((B, C, 9 * C), lambda n: (0, 0, 0)),   # im2col conv weights (bf16)
                pl.BlockSpec((1, HWP), lambda n: (0, 0)),           # valid-col mask / (H*W)
                pl.BlockSpec((B, C, 1), lambda n: (0, 0, 0)),       # branch BN scale
                pl.BlockSpec((B, C, 1), lambda n: (0, 0, 0)),       # branch BN bias
                pl.BlockSpec((L, C), lambda n: (0, 0)),             # fc weight
                pl.BlockSpec((L, 1), lambda n: (0, 0)),             # fc BN scale
                pl.BlockSpec((L, 1), lambda n: (0, 0)),             # fc BN bias
                pl.BlockSpec((B, C, L), lambda n: (0, 0, 0)),       # fcs weights
                pl.BlockSpec((B, C, 1), lambda n: (0, 0, 0)),       # fcs biases
            ],
            out_specs=pl.BlockSpec((1, C, HWP), lambda n: (n, 0, 0)),
            scratch_shapes=[pltpu.VMEM((B, C, HWP), jnp.float32)],  # branch features
        ),
        compiler_params=pltpu.CompilerParams(dimension_semantics=("parallel",)),
    )(xf, w_im, mask, params["bn_scale"], params["bn_bias"],
      params["fc_w"], params["fc_scale"], params["fc_bias"],
      params["fcs_w"], params["fcs_b"])

    # Drop the junk pad columns: (N, C, H*WP) -> (N, C, H, W). No transpose.
    return out_flat.reshape(N, C, H, WP)[:, :, :, :W]


def init_params(key, channels, branches=2, groups=4, reduce=4, len_=8):
    C, G, B = channels, groups, branches
    L = max(channels // reduce, len_)
    Cg = C // G
    eps = 1e-5
    ks = jax.random.split(key, 12)

    # grouped conv weights, torch layout (C_out, C_in/G, 3, 3) per branch
    w_conv = 0.1 * jax.random.normal(ks[0], (B, C, Cg, 3, 3), jnp.float32)
    # BatchNorm2d(channels) per branch (inference / running statistics)
    # TODO(synk): training-mode batch statistics are not reproduced.
    gamma = jax.random.uniform(ks[1], (B, C), minval=0.5, maxval=1.5)
    beta = 0.1 * jax.random.normal(ks[2], (B, C))
    rmean = 0.1 * jax.random.normal(ks[3], (B, C))
    rvar = jax.random.uniform(ks[4], (B, C), minval=0.5, maxval=1.5)
    bn_scale = gamma / jnp.sqrt(rvar + eps)
    bn_bias = beta - rmean * bn_scale

    # fc: Conv2d(C, L, 1, bias=False) + BatchNorm2d(L)
    fc_wt = 0.1 * jax.random.normal(ks[5], (L, C), jnp.float32)
    fgamma = jax.random.uniform(ks[6], (L,), minval=0.5, maxval=1.5)
    fbeta = 0.1 * jax.random.normal(ks[7], (L,))
    fmean = 0.1 * jax.random.normal(ks[8], (L,))
    fvar = jax.random.uniform(ks[9], (L,), minval=0.5, maxval=1.5)
    fc_scale = fgamma / jnp.sqrt(fvar + eps)
    fc_bias = fbeta - fmean * fc_scale

    # fcs[i]: Conv2d(L, C, 1) with bias, torch weight layout (C, L)
    fcs_wt = 0.1 * jax.random.normal(ks[10], (B, C, L), jnp.float32)
    fcs_b = 0.1 * jax.random.normal(ks[11], (B, C))

    # dense im2col weight (C_out, 9*C_in): block-diagonal per group within each
    # tap, slab row order = tap*C + in_channel (matches the kernel's concat).
    # Note: at large C this wastes Gx zeros; switch to per-group K-concatenation
    # before scaling channels (harmless at C=32: MXU pads to 128 anyway).
    w_np = np.asarray(w_conv)
    w_im = np.zeros((B, C, 9 * C), np.float32)
    for b in range(B):
        for co in range(C):
            g = co // Cg
            for k in range(Cg):
                ci = g * Cg + k
                for ky in range(3):
                    for kx in range(3):
                        w_im[b, co, (ky * 3 + kx) * C + ci] = w_np[b, co, k, ky, kx]

    raw = dict(w_conv=w_conv, bn_scale=bn_scale, bn_bias=bn_bias,
               fc_wt=fc_wt, fc_scale=fc_scale, fc_bias=fc_bias,
               fcs_wt=fcs_wt, fcs_b=fcs_b, groups=G)
    kernel_params = dict(
        w_im=jnp.asarray(w_im).astype(jnp.bfloat16),   # bf16 MXU inputs, f32 accum
        bn_scale=bn_scale[:, :, None],                 # (B, C, 1)
        bn_bias=bn_bias[:, :, None],                   # (B, C, 1)
        fc_w=fc_wt,                                    # (L, C)
        fc_scale=fc_scale[:, None],                    # (L, 1)
        fc_bias=fc_bias[:, None],                      # (L, 1)
        fcs_w=fcs_wt,                                  # (B, C, L)
        fcs_b=fcs_b[:, :, None],                       # (B, C, 1)
    )
    return raw, kernel_params


def skconv_reference(x_nchw, raw):
    """Pure-JAX NCHW reference mirroring the PyTorch forward (eval-mode BN)."""
    B = raw["w_conv"].shape[0]
    G = raw["groups"]
    us = []
    for b in range(B):
        d = b + 1
        y = jax.lax.conv_general_dilated(
            x_nchw, raw["w_conv"][b], window_strides=(1, 1),
            padding=((d, d), (d, d)), rhs_dilation=(d, d),
            feature_group_count=G,
            dimension_numbers=("NCHW", "OIHW", "NCHW"))
        y = y * raw["bn_scale"][b][None, :, None, None] \
            + raw["bn_bias"][b][None, :, None, None]
        us.append(jnp.maximum(y, 0.0))
    u = jnp.stack(us, axis=1)                        # (N, B, C, H, W)
    s = jnp.sum(u, axis=1)
    gap = jnp.mean(s, axis=(2, 3))                   # (N, C)
    z = gap @ raw["fc_wt"].T
    z = jnp.maximum(z * raw["fc_scale"][None, :] + raw["fc_bias"][None, :], 0.0)
    logits = jnp.stack([z @ raw["fcs_wt"][b].T + raw["fcs_b"][b][None, :]
                        for b in range(B)], axis=1)  # (N, B, C)
    att = jax.nn.softmax(logits, axis=1)
    return jnp.sum(u * att[:, :, :, None, None], axis=1)


if __name__ == "__main__":
    # SKConv(channels=32, branches=2, groups=4, reduce=4, stride=1, len=8) -> L=8
    N, C, H, W = 2, 32, 16, 16
    branches, groups, reduce, len_ = 2, 4, 4, 8

    key = jax.random.PRNGKey(0)
    kx, kp = jax.random.split(key)
    x = jax.random.normal(kx, (N, C, H, W), jnp.float32)

    raw, kparams = init_params(kp, C, branches, groups, reduce, len_)

    out = jax.block_until_ready(skconv_forward(x, kparams))

    ref = jax.block_until_ready(skconv_reference(x, raw))
    # bf16 conv matmuls (f32 accumulation) + approx reciprocal in the softmax.
    np.testing.assert_allclose(np.asarray(out), np.asarray(ref),
                               rtol=2e-2, atol=2e-2)
    print("KERNEL_OK")
</pallas_src>

<mosaic_0001>
module attributes {stable_mosaic.version = 11 : i64} {
  func.func @kernel(%arg0: i32, %arg1: memref<1x32x404xf32, #tpu.memory_space<vmem>>, %arg2: memref<2x32x288xbf16, #tpu.memory_space<vmem>>, %arg3: memref<1x320xf32, #tpu.memory_space<vmem>>, %arg4: memref<2x32x1xf32, #tpu.memory_space<vmem>>, %arg5: memref<2x32x1xf32, #tpu.memory_space<vmem>>, %arg6: memref<8x32xf32, #tpu.memory_space<vmem>>, %arg7: memref<8x1xf32, #tpu.memory_space<vmem>>, %arg8: memref<8x1xf32, #tpu.memory_space<vmem>>, %arg9: memref<2x32x8xf32, #tpu.memory_space<vmem>>, %arg10: memref<2x32x1xf32, #tpu.memory_space<vmem>>, %arg11: memref<1x32x320xf32, #tpu.memory_space<vmem>>, %arg12: memref<2x32x320xf32, #tpu.memory_space<vmem>>) attributes {dimension_semantics = [#tpu.dimension_semantics<parallel>], iteration_bounds = array<i64: 2>, scalar_prefetch = 0 : i64, scratch_operands = 1 : i64, tpu.core_type = #tpu.core_type<tc>, window_params = [{transform_indices = @transform_0, window_bounds = array<i64: 1, 32, 404>}, {pipeline_mode = #tpu.pipeline_mode<synchronous>, transform_indices = @transform_1, window_bounds = array<i64: 2, 32, 288>}, {pipeline_mode = #tpu.pipeline_mode<synchronous>, transform_indices = @transform_2, window_bounds = array<i64: 1, 320>}, {pipeline_mode = #tpu.pipeline_mode<synchronous>, transform_indices = @transform_3, window_bounds = array<i64: 2, 32, 1>}, {pipeline_mode = #tpu.pipeline_mode<synchronous>, transform_indices = @transform_4, window_bounds = array<i64: 2, 32, 1>}, {pipeline_mode = #tpu.pipeline_mode<synchronous>, transform_indices = @transform_5, window_bounds = array<i64: 8, 32>}, {pipeline_mode = #tpu.pipeline_mode<synchronous>, transform_indices = @transform_6, window_bounds = array<i64: 8, 1>}, {pipeline_mode = #tpu.pipeline_mode<synchronous>, transform_indices = @transform_7, window_bounds = array<i64: 8, 1>}, {pipeline_mode = #tpu.pipeline_mode<synchronous>, transform_indices = @transform_8, window_bounds = array<i64: 2, 32, 8>}, {pipeline_mode = #tpu.pipeline_mode<synchronous>, transform_indices = @transform_9, window_bounds = array<i64: 2, 32, 1>}, {transform_indices = @transform_10, window_bounds = array<i64: 1, 32, 320>}]} {
    %c0 = arith.constant 0 : index
    %c0_0 = arith.constant 0 : index
    %c21 = arith.constant 21 : index
    %0 = vector.load %arg1[%c0, %c0_0, %c21] : memref<1x32x404xf32, #tpu.memory_space<vmem>>, vector<1x32x320xf32>
    %1 = vector.shape_cast %0 : vector<1x32x320xf32> to vector<32x320xf32>
    %c0_1 = arith.constant 0 : index
    %c0_2 = arith.constant 0 : index
    %c22 = arith.constant 22 : index
    %2 = vector.load %arg1[%c0_1, %c0_2, %c22] : memref<1x32x404xf32, #tpu.memory_space<vmem>>, vector<1x32x320xf32>
    %3 = vector.shape_cast %2 : vector<1x32x320xf32> to vector<32x320xf32>
    %c0_3 = arith.constant 0 : index
    %c0_4 = arith.constant 0 : index
    %c23 = arith.constant 23 : index
    %4 = vector.load %arg1[%c0_3, %c0_4, %c23] : memref<1x32x404xf32, #tpu.memory_space<vmem>>, vector<1x32x320xf32>
    %5 = vector.shape_cast %4 : vector<1x32x320xf32> to vector<32x320xf32>
    %c0_5 = arith.constant 0 : index
    %c0_6 = arith.constant 0 : index
    %c41 = arith.constant 41 : index
    %6 = vector.load %arg1[%c0_5, %c0_6, %c41] : memref<1x32x404xf32, #tpu.memory_space<vmem>>, vector<1x32x320xf32>
    %7 = vector.shape_cast %6 : vector<1x32x320xf32> to vector<32x320xf32>
    %c0_7 = arith.constant 0 : index
    %c0_8 = arith.constant 0 : index
    %c42 = arith.constant 42 : index
    %8 = vector.load %arg1[%c0_7, %c0_8, %c42] : memref<1x32x404xf32, #tpu.memory_space<vmem>>, vector<1x32x320xf32>
    %9 = vector.shape_cast %8 : vector<1x32x320xf32> to vector<32x320xf32>
    %c0_9 = arith.constant 0 : index
    %c0_10 = arith.constant 0 : index
    %c43 = arith.constant 43 : index
    %10 = vector.load %arg1[%c0_9, %c0_10, %c43] : memref<1x32x404xf32, #tpu.memory_space<vmem>>, vector<1x32x320xf32>
    %11 = vector.shape_cast %10 : vector<1x32x320xf32> to vector<32x320xf32>
    %c0_11 = arith.constant 0 : index
    %c0_12 = arith.constant 0 : index
    %c61 = arith.constant 61 : index
    %12 = vector.load %arg1[%c0_11, %c0_12, %c61] : memref<1x32x404xf32, #tpu.memory_space<vmem>>, vector<1x32x320xf32>
    %13 = vector.shape_cast %12 : vector<1x32x320xf32> to vector<32x320xf32>
    %c0_13 = arith.constant 0 : index
    %c0_14 = arith.constant 0 : index
    %c62 = arith.constant 62 : index
    %14 = vector.load %arg1[%c0_13, %c0_14, %c62] : memref<1x32x404xf32, #tpu.memory_space<vmem>>, vector<1x32x320xf32>
    %15 = vector.shape_cast %14 : vector<1x32x320xf32> to vector<32x320xf32>
    %c0_15 = arith.constant 0 : index
    %c0_16 = arith.constant 0 : index
    %c63 = arith.constant 63 : index
    %16 = vector.load %arg1[%c0_15, %c0_16, %c63] : memref<1x32x404xf32, #tpu.memory_space<vmem>>, vector<1x32x320xf32>
    %17 = vector.shape_cast %16 : vector<1x32x320xf32> to vector<32x320xf32>
    %18 = tpu.concatenate %1, %3, %5, %7, %9, %11, %13, %15, %17 in 0 : vector<32x320xf32>, vector<32x320xf32>, vector<32x320xf32>, vector<32x320xf32>, vector<32x320xf32>, vector<32x320xf32>, vector<32x320xf32>, vector<32x320xf32>, vector<32x320xf32> -> vector<288x320xf32>
    %19 = arith.truncf %18 : vector<288x320xf32> to vector<288x320xbf16>
    %c0_17 = arith.constant 0 : index
    %c0_18 = arith.constant 0 : index
    %c0_19 = arith.constant 0 : index
    %20 = vector.load %arg2[%c0_17, %c0_18, %c0_19] : memref<2x32x288xbf16, #tpu.memory_space<vmem>>, vector<1x32x288xbf16>
    %21 = vector.shape_cast %20 : vector<1x32x288xbf16> to vector<32x288xbf16>
    %cst = arith.constant dense<0.000000e+00> : vector<32x320xf32>
    %22 = tpu.matmul %21, %19, %cst {dimension_numbers = #tpu.dot_dimension_numbers<[1], [0], [0], [1], [0, 0, 1, 1], [], []>} : vector<32x288xbf16>, vector<288x320xbf16>, vector<32x320xf32> -> vector<32x320xf32>
    %c0_20 = arith.constant 0 : index
    %c0_21 = arith.constant 0 : index
    %c0_22 = arith.constant 0 : index
    %23 = vector.load %arg4[%c0_20, %c0_21, %c0_22] : memref<2x32x1xf32, #tpu.memory_space<vmem>>, vector<1x32x1xf32>
    %24 = vector.shape_cast %23 : vector<1x32x1xf32> to vector<32x1xf32>
    %25 = vector.broadcast %24 : vector<32x1xf32> to vector<32x320xf32>
    %26 = arith.mulf %22, %25 : vector<32x320xf32>
    %c0_23 = arith.constant 0 : index
    %c0_24 = arith.constant 0 : index
    %c0_25 = arith.constant 0 : index
    %27 = vector.load %arg5[%c0_23, %c0_24, %c0_25] : memref<2x32x1xf32, #tpu.memory_space<vmem>>, vector<1x32x1xf32>
    %28 = vector.shape_cast %27 : vector<1x32x1xf32> to vector<32x1xf32>
    %29 = vector.broadcast %28 : vector<32x1xf32> to vector<32x320xf32>
    %30 = arith.addf %26, %29 : vector<32x320xf32>
    %cst_26 = arith.constant 0.000000e+00 : f32
    %31 = vector.broadcast %cst_26 : f32 to vector<32x320xf32>
    %32 = arith.maximumf %30, %31 : vector<32x320xf32>
    %c0_27 = arith.constant 0 : index
    %c0_28 = arith.constant 0 : index
    %c0_29 = arith.constant 0 : index
    %33 = vector.load %arg12[%c0_27, %c0_28, %c0_29] : memref<2x32x320xf32, #tpu.memory_space<vmem>>, vector<1x32x320xf32>
    %34 = vector.shape_cast %33 : vector<1x32x320xf32> to vector<32x320xf32>
    %35 = vector.shape_cast %32 : vector<32x320xf32> to vector<1x32x320xf32>
    tpu.vector_store %arg12[%c0_27, %c0_28, %c0_29], %35 {strides = array<i32>} : memref<2x32x320xf32, #tpu.memory_space<vmem>>, vector<1x32x320xf32>,
    %c0_30 = arith.constant 0 : index
    %c0_31 = arith.constant 0 : index
    %c0_32 = arith.constant 0 : index
    %36 = vector.load %arg1[%c0_30, %c0_31, %c0_32] : memref<1x32x404xf32, #tpu.memory_space<vmem>>, vector<1x32x320xf32>
    %37 = vector.shape_cast %36 : vector<1x32x320xf32> to vector<32x320xf32>
    %c0_33 = arith.constant 0 : index
    %c0_34 = arith.constant 0 : index
    %c2 = arith.constant 2 : index
    %38 = vector.load %arg1[%c0_33, %c0_34, %c2] : memref<1x32x404xf32, #tpu.memory_space<vmem>>, vector<1x32x320xf32>
    %39 = vector.shape_cast %38 : vector<1x32x320xf32> to vector<32x320xf32>
    %c0_35 = arith.constant 0 : index
    %c0_36 = arith.constant 0 : index
    %c4 = arith.constant 4 : index
    %40 = vector.load %arg1[%c0_35, %c0_36, %c4] : memref<1x32x404xf32, #tpu.memory_space<vmem>>, vector<1x32x320xf32>
    %41 = vector.shape_cast %40 : vector<1x32x320xf32> to vector<32x320xf32>
    %c0_37 = arith.constant 0 : index
    %c0_38 = arith.constant 0 : index
    %c40 = arith.constant 40 : index
    %42 = vector.load %arg1[%c0_37, %c0_38, %c40] : memref<1x32x404xf32, #tpu.memory_space<vmem>>, vector<1x32x320xf32>
    %43 = vector.shape_cast %42 : vector<1x32x320xf32> to vector<32x320xf32>
    %c0_39 = arith.constant 0 : index
    %c0_40 = arith.constant 0 : index
    %c42_41 = arith.constant 42 : index
    %44 = vector.load %arg1[%c0_39, %c0_40, %c42_41] : memref<1x32x404xf32, #tpu.memory_space<vmem>>, vector<1x32x320xf32>
    %45 = vector.shape_cast %44 : vector<1x32x320xf32> to vector<32x320xf32>
    %c0_42 = arith.constant 0 : index
    %c0_43 = arith.constant 0 : index
    %c44 = arith.constant 44 : index
    %46 = vector.load %arg1[%c0_42, %c0_43, %c44] : memref<1x32x404xf32, #tpu.memory_space<vmem>>, vector<1x32x320xf32>
    %47 = vector.shape_cast %46 : vector<1x32x320xf32> to vector<32x320xf32>
    %c0_44 = arith.constant 0 : index
    %c0_45 = arith.constant 0 : index
    %c80 = arith.constant 80 : index
    %48 = vector.load %arg1[%c0_44, %c0_45, %c80] : memref<1x32x404xf32, #tpu.memory_space<vmem>>, vector<1x32x320xf32>
    %49 = vector.shape_cast %48 : vector<1x32x320xf32> to vector<32x320xf32>
    %c0_46 = arith.constant 0 : index
    %c0_47 = arith.constant 0 : index
    %c82 = arith.constant 82 : index
    %50 = vector.load %arg1[%c0_46, %c0_47, %c82] : memref<1x32x404xf32, #tpu.memory_space<vmem>>, vector<1x32x320xf32>
    %51 = vector.shape_cast %50 : vector<1x32x320xf32> to vector<32x320xf32>
    %c0_48 = arith.constant 0 : index
    %c0_49 = arith.constant 0 : index
    %c84 = arith.constant 84 : index
    %52 = vector.load %arg1[%c0_48, %c0_49, %c84] : memref<1x32x404xf32, #tpu.memory_space<vmem>>, vector<1x32x320xf32>
    %53 = vector.shape_cast %52 : vector<1x32x320xf32> to vector<32x320xf32>
    %54 = tpu.concatenate %37, %39, %41, %43, %45, %47, %49, %51, %53 in 0 : vector<32x320xf32>, vector<32x320xf32>, vector<32x320xf32>, vector<32x320xf32>, vector<32x320xf32>, vector<32x320xf32>, vector<32x320xf32>, vector<32x320xf32>, vector<32x320xf32> -> vector<288x320xf32>
    %55 = arith.truncf %54 : vector<288x320xf32> to vector<288x320xbf16>
    %c1 = arith.constant 1 : index
    %c0_50 = arith.constant 0 : index
    %c0_51 = arith.constant 0 : index
    %56 = vector.load %arg2[%c1, %c0_50, %c0_51] : memref<2x32x288xbf16, #tpu.memory_space<vmem>>, vector<1x32x288xbf16>
    %57 = vector.shape_cast %56 : vector<1x32x288xbf16> to vector<32x288xbf16>
    %cst_52 = arith.constant dense<0.000000e+00> : vector<32x320xf32>
    %58 = tpu.matmul %57, %55, %cst_52 {dimension_numbers = #tpu.dot_dimension_numbers<[1], [0], [0], [1], [0, 0, 1, 1], [], []>} : vector<32x288xbf16>, vector<288x320xbf16>, vector<32x320xf32> -> vector<32x320xf32>
    %c1_53 = arith.constant 1 : index
    %c0_54 = arith.constant 0 : index
    %c0_55 = arith.constant 0 : index
    %59 = vector.load %arg4[%c1_53, %c0_54, %c0_55] : memref<2x32x1xf32, #tpu.memory_space<vmem>>, vector<1x32x1xf32>
    %60 = vector.shape_cast %59 : vector<1x32x1xf32> to vector<32x1xf32>
    %61 = vector.broadcast %60 : vector<32x1xf32> to vector<32x320xf32>
    %62 = arith.mulf %58, %61 : vector<32x320xf32>
    %c1_56 = arith.constant 1 : index
    %c0_57 = arith.constant 0 : index
    %c0_58 = arith.constant 0 : index
    %63 = vector.load %arg5[%c1_56, %c0_57, %c0_58] : memref<2x32x1xf32, #tpu.memory_space<vmem>>, vector<1x32x1xf32>
    %64 = vector.shape_cast %63 : vector<1x32x1xf32> to vector<32x1xf32>
    %65 = vector.broadcast %64 : vector<32x1xf32> to vector<32x320xf32>
    %66 = arith.addf %62, %65 : vector<32x320xf32>
    %cst_59 = arith.constant 0.000000e+00 : f32
    %67 = vector.broadcast %cst_59 : f32 to vector<32x320xf32>
    %68 = arith.maximumf %66, %67 : vector<32x320xf32>
    %c1_60 = arith.constant 1 : index
    %c0_61 = arith.constant 0 : index
    %c0_62 = arith.constant 0 : index
    %69 = vector.load %arg12[%c1_60, %c0_61, %c0_62] : memref<2x32x320xf32, #tpu.memory_space<vmem>>, vector<1x32x320xf32>
    %70 = vector.shape_cast %69 : vector<1x32x320xf32> to vector<32x320xf32>
    %71 = vector.shape_cast %68 : vector<32x320xf32> to vector<1x32x320xf32>
    tpu.vector_store %arg12[%c1_60, %c0_61, %c0_62], %71 {strides = array<i32>} : memref<2x32x320xf32, #tpu.memory_space<vmem>>, vector<1x32x320xf32>,
    %c0_63 = arith.constant 0 : index
    %c0_64 = arith.constant 0 : index
    %c0_65 = arith.constant 0 : index
    %72 = vector.load %arg12[%c0_63, %c0_64, %c0_65] : memref<2x32x320xf32, #tpu.memory_space<vmem>>, vector<1x32x320xf32>
    %73 = vector.shape_cast %72 : vector<1x32x320xf32> to vector<32x320xf32>
    %c1_66 = arith.constant 1 : index
    %c0_67 = arith.constant 0 : index
    %c0_68 = arith.constant 0 : index
    %74 = vector.load %arg12[%c1_66, %c0_67, %c0_68] : memref<2x32x320xf32, #tpu.memory_space<vmem>>, vector<1x32x320xf32>
    %75 = vector.shape_cast %74 : vector<1x32x320xf32> to vector<32x320xf32>
    %76 = arith.addf %73, %75 : vector<32x320xf32>
    %c0_69 = arith.constant 0 : index
    %c0_70 = arith.constant 0 : index
    %77 = vector.load %arg3[%c0_69, %c0_70] : memref<1x320xf32, #tpu.memory_space<vmem>>, vector<1x320xf32>
    %78 = vector.broadcast %77 : vector<1x320xf32> to vector<32x320xf32>
    %79 = arith.mulf %76, %78 : vector<32x320xf32>
    %cst_71 = arith.constant dense<0.000000e+00> : vector<32xf32>
    %80 = vector.multi_reduction <add>, %79, %cst_71 [1] : vector<32x320xf32> to vector<32xf32>
    %81 = vector.shape_cast %80 : vector<32xf32> to vector<32x1xf32>
    %c0_72 = arith.constant 0 : index
    %c0_73 = arith.constant 0 : index
    %82 = vector.load %arg6[%c0_72, %c0_73] : memref<8x32xf32, #tpu.memory_space<vmem>>, vector<8x32xf32>
    %cst_74 = arith.constant dense<0.000000e+00> : vector<8x1xf32>
    %83 = tpu.matmul %82, %81, %cst_74 {dimension_numbers = #tpu.dot_dimension_numbers<[1], [0], [0], [1], [0, 0, 1, 1], [], []>} : vector<8x32xf32>, vector<32x1xf32>, vector<8x1xf32> -> vector<8x1xf32>
    %c0_75 = arith.constant 0 : index
    %c0_76 = arith.constant 0 : index
    %84 = vector.load %arg7[%c0_75, %c0_76] : memref<8x1xf32, #tpu.memory_space<vmem>>, vector<8x1xf32>
    %85 = arith.mulf %83, %84 : vector<8x1xf32>
    %c0_77 = arith.constant 0 : index
    %c0_78 = arith.constant 0 : index
    %86 = vector.load %arg8[%c0_77, %c0_78] : memref<8x1xf32, #tpu.memory_space<vmem>>, vector<8x1xf32>
    %87 = arith.addf %85, %86 : vector<8x1xf32>
    %cst_79 = arith.constant 0.000000e+00 : f32
    %88 = vector.broadcast %cst_79 : f32 to vector<8x1xf32>
    %89 = arith.maximumf %87, %88 : vector<8x1xf32>
    %c0_80 = arith.constant 0 : index
    %c0_81 = arith.constant 0 : index
    %c0_82 = arith.constant 0 : index
    %90 = vector.load %arg9[%c0_80, %c0_81, %c0_82] : memref<2x32x8xf32, #tpu.memory_space<vmem>>, vector<1x32x8xf32>
    %91 = vector.shape_cast %90 : vector<1x32x8xf32> to vector<32x8xf32>
    %cst_83 = arith.constant dense<0.000000e+00> : vector<32x1xf32>
    %92 = tpu.matmul %91, %89, %cst_83 {dimension_numbers = #tpu.dot_dimension_numbers<[1], [0], [0], [1], [0, 0, 1, 1], [], []>} : vector<32x8xf32>, vector<8x1xf32>, vector<32x1xf32> -> vector<32x1xf32>
    %c0_84 = arith.constant 0 : index
    %c0_85 = arith.constant 0 : index
    %c0_86 = arith.constant 0 : index
    %93 = vector.load %arg10[%c0_84, %c0_85, %c0_86] : memref<2x32x1xf32, #tpu.memory_space<vmem>>, vector<1x32x1xf32>
    %94 = vector.shape_cast %93 : vector<1x32x1xf32> to vector<32x1xf32>
    %95 = arith.addf %92, %94 : vector<32x1xf32>
    %c1_87 = arith.constant 1 : index
    %c0_88 = arith.constant 0 : index
    %c0_89 = arith.constant 0 : index
    %96 = vector.load %arg9[%c1_87, %c0_88, %c0_89] : memref<2x32x8xf32, #tpu.memory_space<vmem>>, vector<1x32x8xf32>
    %97 = vector.shape_cast %96 : vector<1x32x8xf32> to vector<32x8xf32>
    %cst_90 = arith.constant dense<0.000000e+00> : vector<32x1xf32>
    %98 = tpu.matmul %97, %89, %cst_90 {dimension_numbers = #tpu.dot_dimension_numbers<[1], [0], [0], [1], [0, 0, 1, 1], [], []>} : vector<32x8xf32>, vector<8x1xf32>, vector<32x1xf32> -> vector<32x1xf32>
    %c1_91 = arith.constant 1 : index
    %c0_92 = arith.constant 0 : index
    %c0_93 = arith.constant 0 : index
    %99 = vector.load %arg10[%c1_91, %c0_92, %c0_93] : memref<2x32x1xf32, #tpu.memory_space<vmem>>, vector<1x32x1xf32>
    %100 = vector.shape_cast %99 : vector<1x32x1xf32> to vector<32x1xf32>
    %101 = arith.addf %98, %100 : vector<32x1xf32>
    %102 = arith.maximumf %95, %101 : vector<32x1xf32>
    %103 = arith.subf %95, %102 : vector<32x1xf32>
    %104 = math.exp %103 : vector<32x1xf32>
    %105 = arith.subf %101, %102 : vector<32x1xf32>
    %106 = math.exp %105 : vector<32x1xf32>
    %107 = arith.addf %104, %106 : vector<32x1xf32>
    %108 = tpu.reciprocal %107 {approx = true} : vector<32x1xf32> -> vector<32x1xf32>
    %c0_94 = arith.constant 0 : index
    %c0_95 = arith.constant 0 : index
    %c0_96 = arith.constant 0 : index
    %109 = vector.load %arg12[%c0_94, %c0_95, %c0_96] : memref<2x32x320xf32, #tpu.memory_space<vmem>>, vector<1x32x320xf32>
    %110 = vector.shape_cast %109 : vector<1x32x320xf32> to vector<32x320xf32>
    %111 = arith.mulf %104, %108 : vector<32x1xf32>
    %112 = vector.broadcast %111 : vector<32x1xf32> to vector<32x320xf32>
    %113 = arith.mulf %110, %112 : vector<32x320xf32>
    %c1_97 = arith.constant 1 : index
    %c0_98 = arith.constant 0 : index
    %c0_99 = arith.constant 0 : index
    %114 = vector.load %arg12[%c1_97, %c0_98, %c0_99] : memref<2x32x320xf32, #tpu.memory_space<vmem>>, vector<1x32x320xf32>
    %115 = vector.shape_cast %114 : vector<1x32x320xf32> to vector<32x320xf32>
    %116 = arith.mulf %106, %108 : vector<32x1xf32>
    %117 = vector.broadcast %116 : vector<32x1xf32> to vector<32x320xf32>
    %118 = arith.mulf %115, %117 : vector<32x320xf32>
    %119 = arith.addf %113, %118 : vector<32x320xf32>
    %c0_100 = arith.constant 0 : index
    %c0_101 = arith.constant 0 : index
    %c0_102 = arith.constant 0 : index
    %120 = vector.load %arg11[%c0_100, %c0_101, %c0_102] : memref<1x32x320xf32, #tpu.memory_space<vmem>>, vector<1x32x320xf32>
    %121 = vector.shape_cast %120 : vector<1x32x320xf32> to vector<32x320xf32>
    %122 = vector.shape_cast %119 : vector<32x320xf32> to vector<1x32x320xf32>
    tpu.vector_store %arg11[%c0_100, %c0_101, %c0_102], %122 {strides = array<i32>} : memref<1x32x320xf32, #tpu.memory_space<vmem>>, vector<1x32x320xf32>,
    return
  }
  func.func @transform_0(%arg0: i32) -> (i32, i32, i32) {
    %c0_i32 = arith.constant 0 : i32
    %c0_i32_0 = arith.constant 0 : i32
    %c0_i32_1 = arith.constant 0 : i32
    return %arg0, %c0_i32, %c0_i32_0 : i32, i32, i32
  }
  func.func @transform_1(%arg0: i32) -> (i32, i32, i32) {
    %c0_i32 = arith.constant 0 : i32
    %c0_i32_0 = arith.constant 0 : i32
    %c0_i32_1 = arith.constant 0 : i32
    %c0_i32_2 = arith.constant 0 : i32
    return %c0_i32, %c0_i32_0, %c0_i32_1 : i32, i32, i32
  }
  func.func @transform_2(%arg0: i32) -> (i32, i32) {
    %c0_i32 = arith.constant 0 : i32
    %c0_i32_0 = arith.constant 0 : i32
    %c0_i32_1 = arith.constant 0 : i32
    return %c0_i32, %c0_i32_0 : i32, i32
  }
  func.func @transform_3(%arg0: i32) -> (i32, i32, i32) {
    %c0_i32 = arith.constant 0 : i32
    %c0_i32_0 = arith.constant 0 : i32
    %c0_i32_1 = arith.constant 0 : i32
    %c0_i32_2 = arith.constant 0 : i32
    return %c0_i32, %c0_i32_0, %c0_i32_1 : i32, i32, i32
  }
  func.func @transform_4(%arg0: i32) -> (i32, i32, i32) {
    %c0_i32 = arith.constant 0 : i32
    %c0_i32_0 = arith.constant 0 : i32
    %c0_i32_1 = arith.constant 0 : i32
    %c0_i32_2 = arith.constant 0 : i32
    return %c0_i32, %c0_i32_0, %c0_i32_1 : i32, i32, i32
  }
  func.func @transform_5(%arg0: i32) -> (i32, i32) {
    %c0_i32 = arith.constant 0 : i32
    %c0_i32_0 = arith.constant 0 : i32
    %c0_i32_1 = arith.constant 0 : i32
    return %c0_i32, %c0_i32_0 : i32, i32
  }
  func.func @transform_6(%arg0: i32) -> (i32, i32) {
    %c0_i32 = arith.constant 0 : i32
    %c0_i32_0 = arith.constant 0 : i32
    %c0_i32_1 = arith.constant 0 : i32
    return %c0_i32, %c0_i32_0 : i32, i32
  }
  func.func @transform_7(%arg0: i32) -> (i32, i32) {
    %c0_i32 = arith.constant 0 : i32
    %c0_i32_0 = arith.constant 0 : i32
    %c0_i32_1 = arith.constant 0 : i32
    return %c0_i32, %c0_i32_0 : i32, i32
  }
  func.func @transform_8(%arg0: i32) -> (i32, i32, i32) {
    %c0_i32 = arith.constant 0 : i32
    %c0_i32_0 = arith.constant 0 : i32
    %c0_i32_1 = arith.constant 0 : i32
    %c0_i32_2 = arith.constant 0 : i32
    return %c0_i32, %c0_i32_0, %c0_i32_1 : i32, i32, i32
  }
  func.func @transform_9(%arg0: i32) -> (i32, i32, i32) {
    %c0_i32 = arith.constant 0 : i32
    %c0_i32_0 = arith.constant 0 : i32
    %c0_i32_1 = arith.constant 0 : i32
    %c0_i32_2 = arith.constant 0 : i32
    return %c0_i32, %c0_i32_0, %c0_i32_1 : i32, i32, i32
  }
  func.func @transform_10(%arg0: i32) -> (i32, i32, i32) {
    %c0_i32 = arith.constant 0 : i32
    %c0_i32_0 = arith.constant 0 : i32
    %c0_i32_1 = arith.constant 0 : i32
    return %arg0, %c0_i32, %c0_i32_0 : i32, i32, i32
  }
}

</mosaic_0001>

<bundles_post_ra>
// kernel: tpu_custom_call.1
= control target key start
LH: loop header
LB: loop body
LE: loop exit
PB: predicated region body
PF: predicated region fallthrough
CT: control target
= control target key end

     0   :  { %15 = vsyncpa [#allocation4], 0  ;;  %s5032_s0 = inlined_call_operand.vmem [shape: f32[2,32,404], index: 0, kind: input, shape index: {}]   ;;  %s5033_s1 = inlined_call_operand.hbm [shape: bf16[2,32,288], index: 1, kind: input, shape index: {}]   ;;  %s5034_s2 = inlined_call_operand.vmem [shape: f32[1,320], index: 2, kind: input, shape index: {}]   ;;  %s5035_s3 = inlined_call_operand.vmem [shape: f32[2,32,1], index: 3, kind: input, shape index: {}]   ;;  %s5036_s4 = inlined_call_operand.vmem [shape: f32[2,32,1], index: 4, kind: input, shape index: {}]   ;;  %s5037_s5 = inlined_call_operand.vmem [shape: f32[8,32], index: 5, kind: input, shape index: {}]   ;;  %s5038_s6 = inlined_call_operand.vmem [shape: f32[8,1], index: 6, kind: input, shape index: {}]   ;;  %s5039_s7 = inlined_call_operand.vmem [shape: f32[8,1], index: 7, kind: input, shape index: {}]   ;;  %s5040_s8 = inlined_call_operand.vmem [shape: f32[2,32,8], index: 8, kind: input, shape index: {}]   ;;  %s5041_s9 = inlined_call_operand.vmem [shape: f32[2,32,1], index: 9, kind: input, shape index: {}]   ;;  %s5042_s10 = inlined_call_operand.hbm [shape: f32[2,32,320], index: 10, kind: output, shape index: {}]  }
   0x1   :  { %16 = vsyncpa [#allocation5], 0 }
   0x2   :  { %18 = vsyncpa [#allocation5 + $0x1], 0  ;;  %s3847_s13 = smov 0   ;;  %s3849_s14 = smov 0  }
   0x3   :  { %s3851_s15 = smov 0   ;;  %s3853_s16 = smov 0  }
   0x4 LB: > { %s3868_s17 = sadd.s32 4294967295, %s3767_s16   ;;  %s2835_s18 = sadd.s32 4294967294, %s3767_s16   ;;  %s3767_s16 = sphi %s3853_s16, %s5070_s16   ;;  %s3763_s15 = sphi %s3851_s15, %s5069_s15   ;;  %s3759_s14 = sphi %s3849_s14, %s5068_s14   ;;  %s3755_s13 = sphi %s3847_s13, %s5067_s13  }
   0x5   : > { %s3872_s19 = sadd.s32 1, %s3767_s16   ;;  %s246_s20 = sadd.s32 1, %s3763_s15 }
   0x6   : > { %s243_s21 = ssub.s32 %s3767_s16, %s3872_s19  ;;  %p256_p0 = scmp.ne.s32.totalorder %s3763_s15, %s3759_s14 }
   0x7   : > { %p244_p1 = scmp.eq.s32.totalorder %s243_s21, 0  ;;  %p257_p2 = scmp.eq.s32.totalorder %s3868_s17, 1 }
   0x8   : > { %p262_p3 = scmp.ne.s32.totalorder %s3759_s14, %s3755_s13  ;;  %p263_p4 = scmp.eq.s32.totalorder %s2835_s18, 1 }
   0x9   : > { %s3883_s22 = scalar_select %p244_p1, %s3763_s15, %s246_s20  }
   0xa   : > { %p3885_p5 = por %p257_p2, %p256_p0  ;;  %p3889_p6 = por %p263_p4, %p262_p3 }
   0xb   : > { %p2836_p7 = scmp.ge.s32.totalorder %s3767_s16, 1  ;;  %p270_p8 = scmp.lt.s32.totalorder %s3767_s16, 3 }
   0xc   : > { %s5052_s23 = scalar_select %p3885_p5, 1, 0 }
   0xd   : > { %s5053_s24 = scalar_select %p3889_p6, 1, 0 }
   0xe   : > { %p5043_p9 = scmp.eq.s32.totalorder %s3868_s17, 0  ;;  %p3896_p10 = pnand %p2836_p7, %p270_p8 }
   0xf   : > { %s3769_s26 = smov [#allocation3]   ;;  %s3673_s11 = scalar_lea.hbm %s5033_s1, 1536 }
  0x10   : > { %s5054_s25 = scalar_select %p3896_p10, 1, 0 }
  0x11   : > { %s282_s27 = sshll.u32 %s3769_s26, 4  ;;  %p3044_p11 = pneg %p3896_p10  ;;  %s283_s27 = int_to_ptr.vmem [resolvable:$true] %s282_s27 }
  0x12   : > { %p3674_p13 = scmp.ne.s32.totalorder %s5033_s1, %s3673_s11  ;;  %p3680_p3 = scmp.lt.u32.totalorder %s3673_s11, %s5033_s1 }
  0x13   : > { %p3904_p12 = pnand %p5043_p9, %p3044_p11 }
  0x15   : > { %p3675_p0 = pneg %p3904_p12 }
  0x17   : > { %p3676_p1 = pnand %p3675_p0, %p3674_p13 }
  0x19   : > { %p3677_p2 = pneg %p3676_p1 }
  0x1b   : > { %p3682_p4 = pnand %p3680_p3, %p3677_p2 }
  0x1d   : > { %3685 = shalt.err (!%p3682_p4)
}
  0x1e   : > { %s3686_s26 = scalar_lea.vmem %s283_s27, 1536  ;;  %p3694_p9 = scmp.lt.s32.totalorder %s283_s27, %s283_s27 }
  0x1f   : > { %p3687_p7 = scmp.ne.s32.totalorder %s283_s27, %s3686_s26  ;;  %p3695_p6 = scmp.lt.s32.totalorder %s3686_s26, %s3686_s26 }
  0x21   : > { %p3689_p8 = pnand %p3687_p7, %p3675_p0  ;;  %p3696_p5 = por %p3695_p6, %p3694_p9 }
  0x23   : > { %p3690_p11 = pneg %p3689_p8 }
  0x25   : > { %p3697_p10 = pnand %p3696_p5, %p3690_p11 }
  0x27   : > { %3700 = shalt.err (!%p3697_p10)
}
  0x28   : > { %s3770_s29 = smov 192   ;;  %s3771_s30 = smov 12  }
  0x29   : > { %3047 = dma.hbm_to_vmem [thread:$0]  (!%p3904_p12), %s5033_s1, 1536, %s283_s27, [#allocation4], %s3770_s29, %s3770_s29, %s3771_s30  }
  0x2a   : > { %p5056_p13 = scmp.ne.s32.totalorder %s5054_s25, 0 }
  0x2b   : > { %p5057_p1 = scmp.eq.s32.totalorder (!%p5056_p13), %s3868_s17, 0 }
  0x2c   : > { %330 = sbr.rel (%p5056_p13) target bundleno = 1534 (0x5fe), region = 60 }
  0x33   : > { %3746 = dma.done.wait (%p5057_p1), [#allocation4], 1536   ;;  %p5058_p0 = pmov %p5057_p1 }
  0x34   : > { %p368_p5 = scmp.lt.s32.totalorder %s3868_s17, 1  ;;  %s3772_s25 = smov 106   ;;  %vm422_vm0 = vcmask 1039360   ;;  %vm467_vm1 = vcmask 1031168   ;;  %vm512_vm2 = vcmask 883712   ;;  %vm557_vm3 = vcmask 875520  }
  0x35   : > { %3748 = vsyncadd (%p5058_p0), [#allocation4], 4294965760  ;;  %s3773_s27 = smov 107   ;;  %s3774_s29 = smov 127   ;;  %vm602_vm4 = vcmask 867328   ;;  %vm647_vm5 = vcmask 719872  }
  0x36   : > { %s369_s11 = scalar_select %p368_p5, %s3868_s17, 1  ;;  %vm692_vm6 = vcmask 711680   ;;  %vm737_vm7 = vcmask 703488   ;;  %vm1103_vm8 = vcmask 261120   ;;  %vm1507_vm9 = vcmask 1014784  }
  0x37   : > { %s3775_s30 = smov 88   ;;  %s3776_s12 = smov 126   ;;  %vm1640_vm10 = vcmask 687104   ;;  %vm1697_vm11 = vcmask 392192   ;;  %vm1754_vm12 = vcmask 375808   ;;  %vm1811_vm13 = vcmask 359424  }
  0x38   : > { %s2891_s20 = sshll.u32 %s369_s11, 7  ;;  %s3777_s18 = smov 87   ;;  %vm1400_vm14 = vcmask 523264   ;;  %vm3787_vm15 = vmmov 0  }
  0x39   : > { %s3935_s26 = scalar_lea.vmem %s5032_s0, %s2891_s20  ;;  %s3778_s11 = smov 108  }
  0x3a   : > { %v3938_v0 = vld [vmem:[%s3935_s26 + $0x10] sm:$0xff]  ;;  %v3952_v5 = vld [vmem:[%s3935_s26 + $0x8] sm:$0xff]  ;;  %v3966_v9 = vld [vmem:[%s3935_s26] sm:$0xff]  ;;  %s3779_s20 = smov 86   ;;  %s3780_s21 = smov 124  }
  0x3b   : > { %v3941_v1 = vld [vmem:[%s3935_s26 + $0x30] sm:$0xff]  ;;  %v3960_v7 = vpack.i.bf16 %v3938_v0, %v3952_v5  ;;  %v3963_v8 = vld [vmem:[%s3935_s26 + $0x28] sm:$0xff]  ;;  %v3969_v10 = vld [vmem:[%s3935_s26 + $0x20] sm:$0xff]  ;;  %s3782_s28 = smov 84   ;;  %p5065_p9 = scmp.ne.s32.totalorder %s5052_s23, 0 }
  0x3c   : > { %v3944_v2 = vld [vmem:[%s3935_s26 + $0x50] sm:$0xff]  ;;  %v3119_v3 = vpack.i.bf16 %v3941_v1, %v3938_v0  ;;  %v3972_v11 = vld [vmem:[%s3935_s26 + $0x48] sm:$0xff]  ;;  %v3978_v12 = vpack.i.bf16 %v3941_v1, %v3963_v8  ;;  %v3982_v13 = vpack.i.bf16 %v3969_v10, %v3966_v9  ;;  %v380_v16 = vld [vmem:[%s3935_s26 + $0x40] sm:$0xff]  ;;  %v3239_v20 = vpack.i.bf16 %v3963_v8, %v3952_v5 }
  0x3d   : > { %v3949_v4 = vld [vmem:[%s3935_s26 + $0x70] sm:$0xff]  ;;  %v3988_v14 = vpack.i.bf16 %v3944_v2, %v3972_v11  ;;  %v384_v15 = vld [vmem:[%s3935_s26 + $0x68] sm:$0xff]  ;;  %v383_v17 = vld [vmem:[%s3935_s26 + $0x60] sm:$0xff]  ;;  %v760_v22 = vpack.c.bf16 %v3941_v1, %v3938_v0  ;;  %v759_v23 = vpack.c.bf16 %v3963_v8, %v3952_v5  ;;  %v758_v25 = vpack.c.bf16 %v3969_v10, %v3966_v9 }
  0x3e   : > { %3120 = vrot.lane.b32.xlu1 %v3119_v3, %s3772_s25  ;;  %3110 = vrot.lane.b32.xlu0 %v3119_v3, %s3773_s27  ;;  %v3114_v6 = vpack.i.bf16 %v3949_v4, %v3944_v2  ;;  %v3996_v18 = vpack.i.bf16 %v3949_v4, %v384_v15  ;;  %v3998_v19 = vpack.i.bf16 %v383_v17, %v380_v16 }
  0x3f   : > { %v3249_v21 = vpack.i.bf16 %v384_v15, %v3972_v11  ;;  %v762_v24 = vpack.c.bf16 %v384_v15, %v3972_v11  ;;  %v763_v26 = vpack.c.bf16 %v3949_v4, %v3944_v2  ;;  %v761_v27 = vpack.c.bf16 %v383_v17, %v380_v16 }
  0x42   : > { %3115 = vrot.lane.b32.xlu0 %v3114_v6, %s3773_s27  ;;  %3125 = vrot.lane.b32.xlu1 %v3960_v7, %s3774_s29 }
  0x46   : > { %3130 = vrot.lane.b32.xlu0 %v3978_v12, %s3774_s29  ;;  %3135 = vrot.lane.b32.xlu1 %v3982_v13, %s3774_s29 }
  0x4a   : > { %3140 = vrot.lane.b32.xlu0 %v3114_v6, %s3772_s25  ;;  %3145 = vrot.lane.b32.xlu1 %v3988_v14, %s3774_s29 }
  0x4e   : > { %3150 = vrot.lane.b32.xlu0 %v3996_v18, %s3774_s29  ;;  %3155 = vrot.lane.b32.xlu1 %v3998_v19, %s3774_s29  ;;  %s3785_s29 = smov 44  }
  0x52   : > { %3160 = vrot.lane.b32.xlu0 %v3119_v3, %s3775_s30  ;;  %3165 = vrot.lane.b32.xlu1 %v3960_v7, %s3776_s12 }
  0x56   : > { %3170 = vrot.lane.b32.xlu0 %v3978_v12, %s3776_s12  ;;  %3175 = vrot.lane.b32.xlu1 %v3982_v13, %s3776_s12 }
  0x5a   : > { %3180 = vrot.lane.b32.xlu0 %v3114_v6, %s3775_s30  ;;  %3185 = vrot.lane.b32.xlu1 %v3988_v14, %s3776_s12 }
  0x5e   : > { %3190 = vrot.lane.b32.xlu0 %v3996_v18, %s3776_s12  ;;  %3195 = vrot.lane.b32.xlu1 %v3998_v19, %s3776_s12 }
  0x62   : > { %3200 = vrot.lane.b32.xlu0 %v3119_v3, %s3777_s18  ;;  %3205 = vrot.lane.b32.xlu1 %v3960_v7, %s3778_s11 }
  0x66   : > { %3210 = vrot.lane.b32.xlu0 %v3978_v12, %s3778_s11  ;;  %3215 = vrot.lane.b32.xlu1 %v3982_v13, %s3778_s11 }
  0x6a   : > { %3220 = vrot.lane.b32.xlu0 %v3114_v6, %s3777_s18  ;;  %3225 = vrot.lane.b32.xlu1 %v3988_v14, %s3778_s11 }
  0x6e   : > { %3230 = vrot.lane.b32.xlu0 %v3996_v18, %s3778_s11  ;;  %3235 = vrot.lane.b32.xlu1 %v3998_v19, %s3778_s11 }
  0x72   : > { %3240 = vrot.lane.b32.xlu0 %v3239_v20, %s3773_s27  ;;  %3245 = vrot.lane.b32.xlu1 %v3982_v13, %s3773_s27 }
  0x76   : > { %3250 = vrot.lane.b32.xlu0 %v3249_v21, %s3773_s27  ;;  %3255 = vrot.lane.b32.xlu1 %v3998_v19, %s3773_s27 }
  0x7a   : > { %3260 = vrot.lane.b32.xlu0 %v3119_v3, %s3779_s20  ;;  %3265 = vrot.lane.b32.xlu1 %v3239_v20, %s3772_s25 }
  0x7e   : > { %3270 = vrot.lane.b32.xlu0 %v3982_v13, %s3772_s25  ;;  %3275 = vrot.lane.b32.xlu1 %v3114_v6, %s3779_s20 }
  0x82   : > { %3280 = vrot.lane.b32.xlu0 %v3249_v21, %s3772_s25  ;;  %3285 = vrot.lane.b32.xlu1 %v3998_v19, %s3772_s25  ;;  %s3783_s25 = smov 48  }
  0x86   : > { %3290 = vrot.lane.b32.xlu0 %v3239_v20, %s3775_s30  ;;  %3295 = vrot.lane.b32.xlu1 %v3982_v13, %s3775_s30 }
  0x8a   : > { %3300 = vrot.lane.b32.xlu0 %v3249_v21, %s3775_s30  ;;  %3305 = vrot.lane.b32.xlu1 %v3998_v19, %s3775_s30 }
  0x8e   : > { %3310 = vrot.lane.b32.xlu0 %v3239_v20, %s3777_s18  ;;  %3315 = vrot.lane.b32.xlu1 %v3982_v13, %s3777_s18 }
  0x92   : > { %908 = vrot.lane.b32.xlu0 %v760_v22, %s3773_s27  ;;  %3320 = vrot.lane.b32.xlu1 %v3249_v21, %s3777_s18 }
  0x96   : > { %906 = vrot.lane.b32.xlu0 %v759_v23, %s3773_s27  ;;  %3325 = vrot.lane.b32.xlu1 %v3998_v19, %s3777_s18 }
  0x9a   : > { %912 = vrot.lane.b32.xlu0 %v762_v24, %s3773_s27  ;;  %904 = vrot.lane.b32.xlu1 %v758_v25, %s3773_s27 }
  0x9e   : > { %3330 = vrot.lane.b32.xlu0 %v3239_v20, %s3779_s20  ;;  %914 = vrot.lane.b32.xlu1 %v763_v26, %s3773_s27 }
  0xa2   : > { %3335 = vrot.lane.b32.xlu0 %v3982_v13, %s3779_s20  ;;  %910 = vrot.lane.b32.xlu1 %v761_v27, %s3773_s27 }
  0xa6   : > { %3340 = vrot.lane.b32.xlu0 %v3249_v21, %s3779_s20 }
  0xb0   : > { %v4072_v28 = vpop.permute.xlu1 %3120  ;;  %v4074_v29 = vpop.permute.xlu0 %3110 }
  0xb1   : > { %v3113_v30 = vunpack.i.h.bf16 %v4074_v29  ;;  %v3112_v31 = vunpack.i.l.bf16 %v4074_v29  ;;  %v3123_v37 = vunpack.i.h.bf16 %v4072_v28  ;;  %v3122_v38 = vunpack.i.l.bf16 %v4072_v28 }
  0xb3   : > { %v784_v32 = vpack.c.bf16 %v3113_v30, %v3112_v31  ;;  %v790_v46 = vpack.c.bf16 %v3123_v37, %v3122_v38 }
  0xb4   : > { %v4082_v33 = vpop.permute.xlu0 %3115  ;;  %v3126_v34 = vpop.permute.xlu1 %3125 }
  0xb5   : > { %v3118_v35 = vunpack.i.h.bf16 %v4082_v33  ;;  %v3117_v36 = vunpack.i.l.bf16 %v4082_v33  ;;  %956 = vrot.lane.b32.xlu0 %v784_v32, %s3773_s27  ;;  %v3128_v39 = vunpack.i.h.bf16 %v3126_v34  ;;  %v3127_v41 = vunpack.i.l.bf16 %v3126_v34 }
  0xb7   : > { %v787_v40 = vpack.c.bf16 %v3118_v35, %v3117_v36  ;;  %v424_v50 = vsel %vm422_vm0, %v3127_v41, %v3128_v39 }
  0xb8   : > { %v3131_v42 = vpop.permute.xlu0 %3130  ;;  %v3136_v43 = vpop.permute.xlu1 %3135 }
  0xb9   : > { %v3133_v44 = vunpack.i.h.bf16 %v3131_v42  ;;  %v3132_v45 = vunpack.i.l.bf16 %v3131_v42  ;;  %962 = vrot.lane.b32.xlu0 %v787_v40, %s3773_s27  ;;  %v3138_v1 = vunpack.i.h.bf16 %v3136_v43  ;;  %v3137_v2 = vunpack.i.l.bf16 %v3136_v43 }
  0xbb   : > { %v766_v47 = vpack.c.bf16 %v3133_v44, %v3128_v39  ;;  %v426_v51 = vsel %vm422_vm0, %v3132_v45, %v3133_v44  ;;  %v423_v21 = vsel %vm422_vm0, %v3137_v2, %v3127_v41  ;;  %v425_v22 = vsel %vm422_vm0, %v3138_v1, %v3132_v45 }
  0xbc   : > { %v4098_v48 = vpop.permute.xlu0 %3140  ;;  %v3146_v49 = vpop.permute.xlu1 %3145  ;;  %v765_v56 = vpack.c.bf16 %v426_v51, %v424_v50  ;;  %v764_v26 = vpack.c.bf16 %v425_v22, %v423_v21 }
  0xbd   : > { %v3143_v52 = vunpack.i.h.bf16 %v4098_v48  ;;  %v3142_v53 = vunpack.i.l.bf16 %v4098_v48  ;;  %v3148_v54 = vunpack.i.h.bf16 %v3146_v49  ;;  %v3147_v55 = vunpack.i.l.bf16 %v3146_v49  ;;  %968 = vrot.lane.b32.xlu0 %v790_v46, %s3773_s27  ;;  %920 = vrot.lane.b32.xlu1 %v766_v47, %s3773_s27 }
  0xbf   : > { %v793_v57 = vpack.c.bf16 %v3143_v52, %v3142_v53  ;;  %v428_v62 = vsel %vm422_vm0, %v3147_v55, %v3148_v54 }
  0xc0   : > { %v3151_v58 = vpop.permute.xlu0 %3150  ;;  %v3156_v59 = vpop.permute.xlu1 %3155 }
  0xc1   : > { %v3153_v60 = vunpack.i.h.bf16 %v3151_v58  ;;  %v3152_v61 = vunpack.i.l.bf16 %v3151_v58  ;;  %918 = vrot.lane.b32.xlu0 %v765_v56, %s3773_s27  ;;  %974 = vrot.lane.b32.xlu1 %v793_v57, %s3773_s27  ;;  %v3158_v15 = vunpack.i.h.bf16 %v3156_v59  ;;  %v3157_v16 = vunpack.i.l.bf16 %v3156_v59 }
  0xc3   : > { %v769_v63 = vpack.c.bf16 %v3153_v60, %v3148_v54  ;;  %v430_v0 = vsel %vm422_vm0, %v3152_v61, %v3153_v60  ;;  %v427_v40 = vsel %vm422_vm0, %v3157_v16, %v3147_v55  ;;  %v429_v41 = vsel %vm422_vm0, %v3158_v15, %v3152_v61 }
  0xc4   : > { %v4114_v3 = vpop.permute.xlu0 %3160  ;;  %v3166_v4 = vpop.permute.xlu1 %3165  ;;  %v768_v5 = vpack.c.bf16 %v430_v0, %v428_v62  ;;  %v767_v46 = vpack.c.bf16 %v429_v41, %v427_v40  ;;  %vm2410_vm0 = vcmask 64512  }
  0xc5   : > { %v3163_v6 = vunpack.i.h.bf16 %v4114_v3  ;;  %v3162_v8 = vunpack.i.l.bf16 %v4114_v3  ;;  %v3168_v9 = vunpack.i.h.bf16 %v3166_v4  ;;  %v3167_v10 = vunpack.i.l.bf16 %v3166_v4  ;;  %926 = vrot.lane.b32.xlu1 %v769_v63, %s3773_s27 }
  0xc6   : > { %924 = vrot.lane.b32.xlu0 %v768_v5, %s3773_s27 }
  0xc7   : > { %v796_v11 = vpack.c.bf16 %v3163_v6, %v3162_v8  ;;  %v469_v25 = vsel %vm467_vm1, %v3167_v10, %v3168_v9 }
  0xc8   : > { %v3171_v17 = vpop.permute.xlu0 %3170  ;;  %v3176_v20 = vpop.permute.xlu1 %3175 }
  0xc9   : > { %v3173_v23 = vunpack.i.h.bf16 %v3171_v17  ;;  %v3172_v24 = vunpack.i.l.bf16 %v3171_v17  ;;  %980 = vrot.lane.b32.xlu1 %v796_v11, %s3773_s27  ;;  %v3178_v49 = vunpack.i.h.bf16 %v3176_v20  ;;  %v3177_v50 = vunpack.i.l.bf16 %v3176_v20 }
  0xca   : > { %3345 = vrot.lane.b32.xlu0 %v3998_v19, %s3779_s20 }
  0xcb   : > { %v471_v27 = vsel %vm467_vm1, %v3172_v24, %v3173_v23  ;;  %v772_v57 = vpack.c.bf16 %v3173_v23, %v3168_v9  ;;  %v468_v63 = vsel %vm467_vm1, %v3177_v50, %v3167_v10  ;;  %v470_v0 = vsel %vm467_vm1, %v3178_v49, %v3172_v24 }
  0xcc   : > { %v4131_v32 = vpop.permute.xlu0 %3180  ;;  %v3186_v34 = vpop.permute.xlu1 %3185  ;;  %v771_v39 = vpack.c.bf16 %v471_v27, %v469_v25  ;;  %v770_v9 = vpack.c.bf16 %v470_v0, %v468_v63 }
  0xcd   : > { %v3183_v42 = vunpack.i.h.bf16 %v4131_v32  ;;  %v3182_v43 = vunpack.i.l.bf16 %v4131_v32  ;;  %v3188_v44 = vunpack.i.h.bf16 %v3186_v34  ;;  %v3187_v45 = vunpack.i.l.bf16 %v3186_v34  ;;  %916 = vrot.lane.b32.xlu1 %v764_v26, %s3773_s27 }
  0xce   : > { %930 = vrot.lane.b32.xlu0 %v771_v39, %s3773_s27 }
  0xcf   : > { %v799_v47 = vpack.c.bf16 %v3183_v42, %v3182_v43  ;;  %v473_v58 = vsel %vm467_vm1, %v3187_v45, %v3188_v44 }
  0xd0   : > { %v3191_v51 = vpop.permute.xlu0 %3190  ;;  %v3196_v54 = vpop.permute.xlu1 %3195 }
  0xd1   : > { %v3193_v55 = vunpack.i.h.bf16 %v3191_v51  ;;  %v3192_v56 = vunpack.i.l.bf16 %v3191_v51  ;;  %922 = vrot.lane.b32.xlu1 %v767_v46, %s3773_s27  ;;  %v3198_v10 = vunpack.i.h.bf16 %v3196_v54  ;;  %v3197_v15 = vunpack.i.l.bf16 %v3196_v54 }
  0xd2   : > { %986 = vrot.lane.b32.xlu0 %v799_v47, %s3773_s27 }
  0xd3   : > { %v475_v59 = vsel %vm467_vm1, %v3192_v56, %v3193_v55  ;;  %v775_v22 = vpack.c.bf16 %v3193_v55, %v3188_v44  ;;  %v472_v34 = vsel %vm467_vm1, %v3197_v15, %v3187_v45  ;;  %v474_v39 = vsel %vm467_vm1, %v3198_v10, %v3192_v56 }
  0xd4   : > { %v4147_v60 = vpop.permute.xlu0 %3200  ;;  %v3206_v61 = vpop.permute.xlu1 %3205  ;;  %v774_v62 = vpack.c.bf16 %v475_v59, %v473_v58  ;;  %v773_v47 = vpack.c.bf16 %v474_v39, %v472_v34 }
  0xd5   : > { %v3203_v1 = vunpack.i.h.bf16 %v4147_v60  ;;  %v3202_v2 = vunpack.i.l.bf16 %v4147_v60  ;;  %v3208_v4 = vunpack.i.h.bf16 %v3206_v61  ;;  %v3207_v5 = vunpack.i.l.bf16 %v3206_v61  ;;  %932 = vrot.lane.b32.xlu1 %v772_v57, %s3773_s27 }
  0xd6   : > { %936 = vrot.lane.b32.xlu0 %v774_v62, %s3773_s27 }
  0xd7   : > { %v802_v11 = vpack.c.bf16 %v3203_v1, %v3202_v2  ;;  %v514_v23 = vsel %vm512_vm2, %v3207_v5, %v3208_v4 }
  0xd8   : > { %v3211_v16 = vpop.permute.xlu0 %3210  ;;  %v3216_v17 = vpop.permute.xlu1 %3215 }
  0xd9   : > { %v3213_v20 = vunpack.i.h.bf16 %v3211_v16  ;;  %v3212_v21 = vunpack.i.l.bf16 %v3211_v16  ;;  %928 = vrot.lane.b32.xlu1 %v770_v9, %s3773_s27  ;;  %v3218_v50 = vunpack.i.h.bf16 %v3216_v17  ;;  %v3217_v45 = vunpack.i.l.bf16 %v3216_v17 }
  0xda   : > { %992 = vrot.lane.b32.xlu0 %v802_v11, %s3773_s27 }
  0xdb   : > { %v516_v24 = vsel %vm512_vm2, %v3212_v21, %v3213_v20  ;;  %v778_v57 = vpack.c.bf16 %v3213_v20, %v3208_v4  ;;  %v513_v0 = vsel %vm512_vm2, %v3217_v45, %v3207_v5  ;;  %v515_v9 = vsel %vm512_vm2, %v3218_v50, %v3212_v21 }
  0xdc   : > { %v4163_v25 = vpop.permute.xlu0 %3220  ;;  %v3226_v26 = vpop.permute.xlu1 %3225  ;;  %v777_v27 = vpack.c.bf16 %v516_v24, %v514_v23  ;;  %v776_v4 = vpack.c.bf16 %v515_v9, %v513_v0 }
  0xdd   : > { %v3223_v40 = vunpack.i.h.bf16 %v4163_v25  ;;  %v3222_v41 = vunpack.i.l.bf16 %v4163_v25  ;;  %v3228_v46 = vunpack.i.h.bf16 %v3226_v26  ;;  %v3227_v44 = vunpack.i.l.bf16 %v3226_v26  ;;  %938 = vrot.lane.b32.xlu1 %v775_v22, %s3773_s27 }
  0xde   : > { %942 = vrot.lane.b32.xlu0 %v777_v27, %s3773_s27 }
  0xdf   : > { %v805_v49 = vpack.c.bf16 %v3223_v40, %v3222_v41  ;;  %v518_v58 = vsel %vm512_vm2, %v3227_v44, %v3228_v46 }
  0xe0   : > { %v3231_v51 = vpop.permute.xlu0 %3230  ;;  %v3236_v54 = vpop.permute.xlu1 %3235 }
  0xe1   : > { %v3233_v55 = vunpack.i.h.bf16 %v3231_v51  ;;  %v3232_v56 = vunpack.i.l.bf16 %v3231_v51  ;;  %934 = vrot.lane.b32.xlu1 %v773_v47, %s3773_s27  ;;  %v3238_v17 = vunpack.i.h.bf16 %v3236_v54  ;;  %v3237_v5 = vunpack.i.l.bf16 %v3236_v54 }
  0xe2   : > { %998 = vrot.lane.b32.xlu0 %v805_v49, %s3773_s27 }
  0xe3   : > { %v520_v59 = vsel %vm512_vm2, %v3232_v56, %v3233_v55  ;;  %v781_v26 = vpack.c.bf16 %v3233_v55, %v3228_v46  ;;  %v517_v50 = vsel %vm512_vm2, %v3237_v5, %v3227_v44  ;;  %v519_v46 = vsel %vm512_vm2, %v3238_v17, %v3232_v56 }
  0xe4   : > { %v3241_v61 = vpop.permute.xlu0 %3240  ;;  %v3246_v62 = vpop.permute.xlu1 %3245  ;;  %v780_v63 = vpack.c.bf16 %v520_v59, %v518_v58  ;;  %v779_v56 = vpack.c.bf16 %v519_v46, %v517_v50 }
  0xe5   : > { %v3243_v11 = vunpack.i.h.bf16 %v3241_v61  ;;  %v3242_v10 = vunpack.i.l.bf16 %v3241_v61  ;;  %944 = vrot.lane.b32.xlu1 %v778_v57, %s3773_s27  ;;  %v3248_v27 = vunpack.i.h.bf16 %v3246_v62  ;;  %v3247_v34 = vunpack.i.l.bf16 %v3246_v62 }
  0xe6   : > { %948 = vrot.lane.b32.xlu0 %v780_v63, %s3773_s27 }
  0xe7   : > { %v559_v15 = vsel %vm557_vm3, %v3242_v10, %v3112_v31  ;;  %v561_v16 = vsel %vm557_vm3, %v3243_v11, %v3113_v30  ;;  %v3623_v31 = vld [vmem:[#allocation3 + $0x4] ss:$12 sps:$4 sm:$0xff]   ;;  %v558_v55 = vsel %vm557_vm3, %v3247_v34, %v3242_v10  ;;  %v560_v44 = vsel %vm557_vm3, %v3248_v27, %v3243_v11 }
  0xe8   : > { %v3251_v20 = vpop.permute.xlu0 %3250  ;;  %v3256_v21 = vpop.permute.xlu1 %3255  ;;  %v783_v22 = vpack.c.bf16 %v561_v16, %v559_v15  ;;  %1248 = vmatprep.mubr.bf16.mxu1 %v3623_v31  ;;  %1142 = vmatprep.mubr.bf16.mxu0 %v3623_v31  ;;  %v782_v11 = vpack.c.bf16 %v560_v44, %v558_v55 }
  0xe9   : > { %v3253_v23 = vunpack.i.h.bf16 %v3251_v20  ;;  %v3252_v24 = vunpack.i.l.bf16 %v3251_v20  ;;  %940 = vrot.lane.b32.xlu1 %v776_v4, %s3773_s27  ;;  %v3258_v33 = vunpack.i.h.bf16 %v3256_v21 }
  0xea   : > { %954 = vrot.lane.b32.xlu0 %v783_v22, %s3773_s27 }
  0xeb   : > { %v563_v29 = vsel %vm557_vm3, %v3252_v24, %v3117_v36  ;;  %v565_v30 = vsel %vm557_vm3, %v3253_v23, %v3118_v35  ;;  %v3257_v35 = vunpack.i.l.bf16 %v3256_v21  ;;  %v564_v4 = vsel %vm557_vm3, %v3258_v33, %v3253_v23 }
  0xec   : > { %v4197_v39 = vpop.permute.xlu0 %3260  ;;  %v3266_v47 = vpop.permute.xlu1 %3265  ;;  %v786_v49 = vpack.c.bf16 %v565_v30, %v563_v29 }
  0xed   : > { %v3263_v45 = vunpack.i.h.bf16 %v4197_v39  ;;  %v3262_v51 = vunpack.i.l.bf16 %v4197_v39  ;;  %v3268_v54 = vunpack.i.h.bf16 %v3266_v47  ;;  %v3267_v36 = vunpack.i.l.bf16 %v3266_v47  ;;  %950 = vrot.lane.b32.xlu1 %v781_v26, %s3773_s27 }
  0xee   : > { %960 = vrot.lane.b32.xlu0 %v786_v49, %s3773_s27  ;;  %v562_v10 = vsel %vm557_vm3, %v3257_v35, %v3252_v24 }
  0xef   : > { %v808_v57 = vpack.c.bf16 %v3263_v45, %v3262_v51  ;;  %v604_v58 = vsel %vm602_vm4, %v3267_v36, %v3122_v38  ;;  %v606_v59 = vsel %vm602_vm4, %v3268_v54, %v3123_v37  ;;  %v785_v20 = vpack.c.bf16 %v564_v4, %v562_v10 }
  0xf0   : > { %v3271_v61 = vpop.permute.xlu0 %3270  ;;  %v4217_v62 = vpop.permute.xlu1 %3275  ;;  %v789_v63 = vpack.c.bf16 %v606_v59, %v604_v58 }
  0xf1   : > { %v3273_v0 = vunpack.i.h.bf16 %v3271_v61  ;;  %v3272_v9 = vunpack.i.l.bf16 %v3271_v61  ;;  %946 = vrot.lane.b32.xlu1 %v779_v56, %s3773_s27  ;;  %v3278_v27 = vunpack.i.h.bf16 %v4217_v62  ;;  %v3277_v34 = vunpack.i.l.bf16 %v4217_v62 }
  0xf2   : > { %1004 = vrot.lane.b32.xlu0 %v808_v57, %s3773_s27 }
  0xf3   : > { %v603_v38 = vsel %vm602_vm4, %v3272_v9, %v3267_v36  ;;  %v605_v28 = vsel %vm602_vm4, %v3273_v0, %v3268_v54  ;;  %v811_v46 = vpack.c.bf16 %v3278_v27, %v3277_v34 }
  0xf4   : > { %v3281_v37 = vpop.permute.xlu0 %3280  ;;  %v3286_v15 = vpop.permute.xlu1 %3285  ;;  %v788_v16 = vpack.c.bf16 %v605_v28, %v603_v38 }
  0xf5   : > { %v3283_v17 = vunpack.i.h.bf16 %v3281_v37  ;;  %v3282_v5 = vunpack.i.l.bf16 %v3281_v37  ;;  %952 = vrot.lane.b32.xlu1 %v782_v11, %s3773_s27  ;;  %v3288_v31 = vunpack.i.h.bf16 %v3286_v15  ;;  %v3287_v47 = vunpack.i.l.bf16 %v3286_v15 }
  0xf6   : > { %964 = vrot.lane.b32.xlu0 %v788_v16, %s3773_s27 }
  0xf7   : > { %v608_v21 = vsel %vm602_vm4, %v3282_v5, %v3142_v53  ;;  %v610_v22 = vsel %vm602_vm4, %v3283_v17, %v3143_v52  ;;  %v609_v3 = vsel %vm602_vm4, %v3288_v31, %v3283_v17 }
  0xf8   : > { %v3291_v23 = vpop.permute.xlu0 %3290  ;;  %v3296_v24 = vpop.permute.xlu1 %3295  ;;  %v792_v26 = vpack.c.bf16 %v610_v22, %v608_v21 }
  0xf9   : > { %v3293_v29 = vunpack.i.h.bf16 %v3291_v23  ;;  %v3292_v30 = vunpack.i.l.bf16 %v3291_v23  ;;  %958 = vrot.lane.b32.xlu1 %v785_v20, %s3773_s27  ;;  %v3298_v54 = vunpack.i.h.bf16 %v3296_v24  ;;  %v3297_v36 = vunpack.i.l.bf16 %v3296_v24 }
  0xfa   : > { %972 = vrot.lane.b32.xlu0 %v792_v26, %s3773_s27 }
  0xfb   : > { %v649_v48 = vsel %vm647_vm5, %v3292_v30, %v3162_v8  ;;  %v651_v52 = vsel %vm647_vm5, %v3293_v29, %v3163_v6  ;;  %v607_v8 = vsel %vm602_vm4, %v3287_v47, %v3282_v5  ;;  %v648_v58 = vsel %vm647_vm5, %v3297_v36, %v3292_v30 }
  0xfc   : > { %v3301_v53 = vpop.permute.xlu0 %3300  ;;  %v3306_v49 = vpop.permute.xlu1 %3305  ;;  %v795_v50 = vpack.c.bf16 %v651_v52, %v649_v48  ;;  %v791_v57 = vpack.c.bf16 %v609_v3, %v607_v8  ;;  %v650_v59 = vsel %vm647_vm5, %v3298_v54, %v3293_v29 }
  0xfd   : > { %966 = vrot.lane.b32.xlu1 %v789_v63, %s3773_s27  ;;  %v3308_v33 = vunpack.i.h.bf16 %v3306_v49  ;;  %v3307_v6 = vunpack.i.l.bf16 %v3306_v49  ;;  %v3303_v44 = vunpack.i.h.bf16 %v3301_v53  ;;  %v3302_v56 = vunpack.i.l.bf16 %v3301_v53 }
  0xfe   : > { %978 = vrot.lane.b32.xlu0 %v795_v50, %s3773_s27  ;;  %v794_v4 = vpack.c.bf16 %v650_v59, %v648_v58 }
  0xff   : > { %v652_v61 = vsel %vm647_vm5, %v3307_v6, %v3302_v56  ;;  %v654_v63 = vsel %vm647_vm5, %v3308_v33, %v3303_v44  ;;  %v653_v25 = vsel %vm647_vm5, %v3302_v56, %v3182_v43 }
 0x100   : > { %v4251_v35 = vpop.permute.xlu0 %3310  ;;  %v4253_v55 = vpop.permute.xlu1 %3315  ;;  %v797_v38 = vpack.c.bf16 %v654_v63, %v652_v61 }
 0x101   : > { %1010 = vrot.lane.b32.xlu1 %v811_v46, %s3773_s27  ;;  %v3313_v5 = vunpack.i.h.bf16 %v4251_v35  ;;  %v3312_v20 = vunpack.i.l.bf16 %v4251_v35  ;;  %v3318_v30 = vunpack.i.h.bf16 %v4253_v55  ;;  %v3317_v31 = vunpack.i.l.bf16 %v4253_v55 }
 0x102   : > { %3350 = vrot.lane.b32.xlu0 %v3960_v7, %s3776_s12 }
 0x103   : > { %v696_v23 = vsel %vm692_vm6, %v3313_v5, %v3203_v1  ;;  %v694_v24 = vsel %vm692_vm6, %v3312_v20, %v3202_v2  ;;  %v695_v54 = vsel %vm692_vm6, %v3318_v30, %v3313_v5  ;;  %v693_v36 = vsel %vm692_vm6, %v3317_v31, %v3312_v20 }
 0x104   : > { %v4262_v0 = vpop.permute.xlu0 %908  ;;  %v3321_v9 = vpop.permute.xlu1 %3320  ;;  %v801_v43 = vpack.c.bf16 %v696_v23, %v694_v24 }
 0x105   : > { %v3323_v11 = vunpack.i.h.bf16 %v3321_v9  ;;  %v3322_v10 = vunpack.i.l.bf16 %v3321_v9  ;;  %970 = vrot.lane.b32.xlu1 %v791_v57, %s3773_s27 }
 0x106   : > { %3360 = vrot.lane.b32.xlu0 %v3982_v13, %s3776_s12 }
 0x107   : > { %v700_v28 = vsel %vm692_vm6, %v3323_v11, %v3223_v40  ;;  %v698_v37 = vsel %vm692_vm6, %v3322_v10, %v3222_v41  ;;  %v655_v41 = vsel %vm647_vm5, %v3303_v44, %v3183_v42 }
 0x108   : > { %v907_v15 = vpop.permute.xlu0 %906  ;;  %v3326_v16 = vpop.permute.xlu1 %3325  ;;  %v804_v17 = vpack.c.bf16 %v700_v28, %v698_v37  ;;  %v798_v32 = vpack.c.bf16 %v655_v41, %v653_v25 }
 0x109   : > { %976 = vrot.lane.b32.xlu1 %v794_v4, %s3773_s27  ;;  %v1014_v21 = vsel %vm557_vm3, %v907_v15, %v4262_v0  ;;  %v3328_v52 = vunpack.i.h.bf16 %v3326_v16  ;;  %v3327_v53 = vunpack.i.l.bf16 %v3326_v16 }
 0x10a   : > { %982 = vrot.lane.b32.xlu0 %v797_v38, %s3773_s27  ;;  %1110 = vmatprep.subr.bf16.mxu0 %v1014_v21  ;;  %v3781_v21 = vmov 0  }
 0x10b   : > { %v697_v39 = vsel %vm692_vm6, %v3327_v53, %v3322_v10  ;;  %3620 = vset.pattern.permute.xlu1 %v3781_v21  ;;  %3619 = vset.pattern.permute.xlu0 %v3781_v21 }
 0x10c   : > { %v913_v40 = vpop.permute.xlu0 %912  ;;  %v905_v22 = vpop.permute.xlu1 %904 }
 0x10d   : > { %3355 = vrot.lane.b32.xlu1 %v3978_v12, %s3776_s12  ;;  %v1013_v26 = vsel %vm557_vm3, %v905_v22, %v907_v15 }
 0x10e   : > { %3370 = vrot.lane.b32.xlu0 %v3996_v18, %s3776_s12  ;;  %1111 = vmatpush1.bf16.msra.mxu0 %v1013_v26 }
 0x110   : > { %v4296_v42 = vpop.permute.xlu0 %3330  ;;  %v915_v29 = vpop.permute.xlu1 %914 }
 0x111   : > { %v3333_v1 = vunpack.i.h.bf16 %v4296_v42  ;;  %v3332_v60 = vunpack.i.l.bf16 %v4296_v42  ;;  %984 = vrot.lane.b32.xlu1 %v798_v32, %s3773_s27  ;;  %v1016_v2 = vsel %vm557_vm3, %v913_v40, %v915_v29 }
 0x112   : > { %990 = vrot.lane.b32.xlu0 %v801_v43, %s3773_s27  ;;  %1112 = vmatprep.subr.bf16.mxu0 %v1016_v2 }
 0x113   : > { %v741_v47 = vsel %vm737_vm7, %v3333_v1, %v3263_v45  ;;  %v739_v48 = vsel %vm737_vm7, %v3332_v60, %v3262_v51  ;;  %v699_v45 = vsel %vm692_vm6, %v3328_v52, %v3323_v11  ;;  %v800_v51 = vpack.c.bf16 %v695_v54, %v693_v36  ;;  %v1424_v54 = vld [vmem:[%s3935_s26 + $0x38] sm:$0xff] }
 0x114   : > { %v911_v49 = vpop.permute.xlu1 %910  ;;  %v807_v50 = vpack.c.bf16 %v741_v47, %v739_v48  ;;  %v803_v8 = vpack.c.bf16 %v699_v45, %v697_v39  ;;  %v3336_v3 = vpop.permute.xlu0 %3335 }
 0x115   : > { %3365 = vrot.lane.b32.xlu1 %v3988_v14, %s3776_s12  ;;  %v1015_v46 = vsel %vm557_vm3, %v911_v49, %v913_v40  ;;  %v3338_v61 = vunpack.i.h.bf16 %v3336_v3  ;;  %v3337_v63 = vunpack.i.l.bf16 %v3336_v3  ;;  %v4430_v3 = vld [vmem:[#allocation3] ss:$12 sps:$4 sm:$0xff]  }
 0x116   : > { %3380 = vrot.lane.b32.xlu0 %v3960_v7, %s3780_s21  ;;  %1113 = vmatpush1.bf16.msra.mxu0 %v1015_v46  ;;  %v1423_v46 = vld [vmem:[%s3935_s26 + $0x18] sm:$0xff] }
 0x117   : > { %v738_v4 = vsel %vm737_vm7, %v3337_v63, %v3332_v60 }
 0x118   : > { %v3341_v33 = vpop.permute.xlu0 %3340 }
 0x119   : > { %3375 = vrot.lane.b32.xlu1 %v3998_v19, %s3776_s12  ;;  %v3343_v56 = vunpack.i.h.bf16 %v3341_v33  ;;  %v3342_v57 = vunpack.i.l.bf16 %v3341_v33  ;;  %s3037_s12 = smul.u32 1536, %s3868_s17 }
 0x11a   : > { %3390 = vrot.lane.b32.xlu0 %v3982_v13, %s3780_s21 }
 0x11b   : > { %v743_v9 = vsel %vm737_vm7, %v3342_v57, %v3277_v34  ;;  %v745_v11 = vsel %vm737_vm7, %v3343_v56, %v3278_v27  ;;  %v740_v34 = vsel %vm737_vm7, %v3338_v61, %v3333_v1  ;;  %s4979_s11 = scalar_lea.hbm %s5042_s10, %s3037_s12 }
 0x11c   : > { %v810_v62 = vpack.c.bf16 %v745_v11, %v743_v9  ;;  %v806_v28 = vpack.c.bf16 %v740_v34, %v738_v4  ;;  %v4455_v4 = vld [vmem:[#allocation3 + $0x18] ss:$12 sps:$4 sm:$0xff]  }
 0x11d   : > { %988 = vrot.lane.b32.xlu1 %v800_v51, %s3773_s27  ;;  %v4426_v51 = vpack.i.bf16 %v1424_v54, %v1423_v46 }
 0x11e   : > { %994 = vrot.lane.b32.xlu0 %v803_v8, %s3773_s27 }
 0x121   : > { %3385 = vrot.lane.b32.xlu1 %v3978_v12, %s3780_s21 }
 0x122   : > { %3400 = vrot.lane.b32.xlu0 %v3996_v18, %s3780_s21 }
 0x125   : > { %996 = vrot.lane.b32.xlu1 %v804_v17, %s3773_s27 }
 0x126   : > { %3410 = vrot.lane.b32.xlu0 %v3960_v7, %s3775_s30 }
 0x127   : > { %v4333_v6 = vpop.permute.xlu0 %956 }
 0x128   : > { %2892 = vmatprep.subr.bf16.mxu1 %v4333_v6 }
 0x129   : > { %2893 = vmatpush3.bf16.msra.mxu1 %v4262_v0  ;;  %3395 = vrot.lane.b32.xlu1 %v3988_v14, %s3780_s21 }
 0x12a   : > { %3420 = vrot.lane.b32.xlu0 %v3982_v13, %s3775_s30 }
 0x12b   : > { %v4340_v35 = vpop.permute.xlu0 %962 }
 0x12c   : > { %2894 = vmatprep.subr.bf16.mxu1 %v4340_v35 }
 0x12d   : > { %3405 = vrot.lane.b32.xlu1 %v3998_v19, %s3780_s21  ;;  %2895 = vmatpush3.bf16.msra.mxu1 %v915_v29 }
 0x12e   : > { %3430 = vrot.lane.b32.xlu0 %v3996_v18, %s3775_s30 }
 0x12f   : > { %v4346_v55 = vpop.permute.xlu0 %968  ;;  %v921_v44 = vpop.permute.xlu1 %920 }
 0x130   : > { %2896 = vmatprep.subr.bf16.mxu1 %v4346_v55 }
 0x131   : > { %3415 = vrot.lane.b32.xlu1 %v3978_v12, %s3775_s30  ;;  %2897 = vmatpush3.bf16.msra.mxu1 %v921_v44 }
 0x132   : > { %3435 = vrot.lane.b32.xlu0 %v3998_v19, %s3775_s30 }
 0x133   : > { %v919_v58 = vpop.permute.xlu0 %918  ;;  %v4353_v59 = vpop.permute.xlu1 %974 }
 0x134   : > { %2898 = vmatprep.subr.bf16.mxu1 %v4353_v59  ;;  %v1018_v0 = vsel %vm557_vm3, %v919_v58, %v921_v44 }
 0x135   : > { %3425 = vrot.lane.b32.xlu1 %v3988_v14, %s3775_s30  ;;  %1114 = vmatprep.subr.bf16.mxu0 %v1018_v0 }
 0x136   : > { %3440 = vrot.lane.b32.xlu0 %v3960_v7, %s3779_s20 }
 0x137   : > { %v927_v10 = vpop.permute.xlu1 %926 }
 0x138   : > { %v925_v38 = vpop.permute.xlu0 %924  ;;  %2899 = vmatpush3.bf16.msra.mxu1 %v927_v10 }
 0x139   : > { %1002 = vrot.lane.b32.xlu1 %v807_v50, %s3773_s27  ;;  %v1020_v22 = vsel %vm557_vm3, %v925_v38, %v927_v10 }
 0x13a   : > { %1008 = vrot.lane.b32.xlu0 %v810_v62, %s3773_s27  ;;  %v4459_v62 = vld [vmem:[#allocation3 + $0x8] ss:$12 sps:$4 sm:$0xff]  }
 0x13b   : > { %v4375_v27 = vpop.permute.xlu1 %980 }
 0x13c   : > { %v3346_v37 = vpop.permute.xlu0 %3345  ;;  %2900 = vmatprep.subr.bf16.mxu1 %v4375_v27 }
 0x13d   : > { %v3348_v15 = vunpack.i.h.bf16 %v3346_v37  ;;  %v3347_v16 = vunpack.i.l.bf16 %v3346_v37  ;;  %1000 = vrot.lane.b32.xlu1 %v806_v28, %s3773_s27 }
 0x13f   : > { %v744_v17 = vsel %vm737_vm7, %v3348_v15, %v3343_v56  ;;  %v742_v5 = vsel %vm737_vm7, %v3347_v16, %v3342_v57  ;;  %v917_v20 = vpop.permute.xlu1 %916  ;;  %v4433_v56 = vld [vmem:[#allocation3 + $0x1c] ss:$12 sps:$4 sm:$0xff]  }
 0x140   : > { %v931_v40 = vpop.permute.xlu0 %930  ;;  %v1017_v25 = vsel %vm557_vm3, %v917_v20, %v919_v58  ;;  %v809_v41 = vpack.c.bf16 %v744_v17, %v742_v5  ;;  %v1425_v57 = vld [vmem:[%s3935_s26 + $0x58] sm:$0xff] }
 0x141   : > { %3445 = vrot.lane.b32.xlu1 %v3978_v12, %s3779_s20  ;;  %1115 = vmatpush1.bf16.msra.mxu0 %v1017_v25  ;;  %v1426_v58 = vld [vmem:[%s3935_s26 + $0x78] sm:$0xff]  ;;  %v3662_v25 = vld [vmem:[%s3935_s26 + $0x28] sm:$0xff] }
 0x142   : > { %1006 = vrot.lane.b32.xlu0 %v809_v41, %s3773_s27  ;;  %1116 = vmatprep.subr.bf16.mxu0 %v1020_v22  ;;  %v4450_v11 = vpack.i.bf16 %v1426_v58, %v1425_v57  ;;  %s3784_s27 = smov 46  }
 0x143   : > { %v923_v23 = vpop.permute.xlu1 %922 }
 0x144   : > { %v4388_v24 = vpop.permute.xlu0 %986  ;;  %v1019_v26 = vsel %vm557_vm3, %v923_v23, %v925_v38  ;;  %v4489_v23 = vld [vmem:[#allocation3 + $0x20] ss:$12 sps:$4 sm:$0xff]  }
 0x145   : > { %3450 = vrot.lane.b32.xlu1 %v3982_v13, %s3779_s20  ;;  %1117 = vmatpush1.bf16.msra.mxu0 %v1019_v26  ;;  %v3663_v26 = vld [vmem:[%s3935_s26] sm:$0xff] }
 0x146   : > { %3460 = vrot.lane.b32.xlu0 %v3996_v18, %s3779_s20 }
 0x147   : > { %v933_v32 = vpop.permute.xlu1 %932 }
 0x148   : > { %v937_v42 = vpop.permute.xlu0 %936  ;;  %2901 = vmatpush3.bf16.msra.mxu1 %v933_v32  ;;  %v1022_v43 = vsel %vm557_vm3, %v931_v40, %v933_v32  ;;  %v3664_v32 = vld [vmem:[%s3935_s26 + $0x20] sm:$0xff] }
 0x149   : > { %3455 = vrot.lane.b32.xlu1 %v3988_v14, %s3779_s20  ;;  %1118 = vmatprep.subr.bf16.mxu0 %v1022_v43  ;;  %v4498_v43 = vld [vmem:[#allocation3 + $0x34] ss:$12 sps:$4 sm:$0xff]  }
 0x14a   : > { %3470 = vrot.lane.b32.xlu0 %v3960_v7, %s3782_s28  ;;  %2902 = vmatprep.subr.bf16.mxu1 %v4388_v24 }
 0x14b   : > { %v929_v29 = vpop.permute.xlu1 %928 }
 0x14c   : > { %v4400_v1 = vpop.permute.xlu0 %992  ;;  %v1021_v60 = vsel %vm557_vm3, %v929_v29, %v931_v40  ;;  %v3661_v40 = vld [vmem:[%s3935_s26 + $0x8] sm:$0xff] }
 0x14d   : > { %3465 = vrot.lane.b32.xlu1 %v3998_v19, %s3779_s20  ;;  %1119 = vmatpush1.bf16.msra.mxu0 %v1021_v60  ;;  %v1837_v41 = vpack.c.bf16 %v3662_v25, %v3661_v40 }
 0x14e   : > { %3480 = vrot.lane.b32.xlu0 %v3982_v13, %s3782_s28 }
 0x14f   : > { %v939_v2 = vpop.permute.xlu1 %938 }
 0x150   : > { %v943_v30 = vpop.permute.xlu0 %942  ;;  %2903 = vmatpush3.bf16.msra.mxu1 %v939_v2  ;;  %v1024_v31 = vsel %vm557_vm3, %v937_v42, %v939_v2  ;;  %v3665_v2 = vld [vmem:[%s3935_s26 + $0x48] sm:$0xff] }
 0x151   : > { %3475 = vrot.lane.b32.xlu1 %v3978_v12, %s3782_s28  ;;  %1120 = vmatprep.subr.bf16.mxu0 %v1024_v31 }
 0x152   : > { %3490 = vrot.lane.b32.xlu0 %v3996_v18, %s3782_s28  ;;  %2904 = vmatprep.subr.bf16.mxu1 %v4400_v1 }
 0x153   : > { %v935_v47 = vpop.permute.xlu1 %934 }
 0x154   : > { %v4410_v48 = vpop.permute.xlu0 %998  ;;  %v1023_v52 = vsel %vm557_vm3, %v935_v47, %v937_v42  ;;  %v1836_v42 = vpack.c.bf16 %v3664_v32, %v3663_v26 }
 0x155   : > { %3485 = vrot.lane.b32.xlu1 %v3988_v14, %s3782_s28  ;;  %1121 = vmatpush1.bf16.msra.mxu0 %v1023_v52  ;;  %v3667_v52 = vld [vmem:[%s3935_s26 + $0x40] sm:$0xff] }
 0x156   : > { %3500 = vrot.lane.b32.xlu0 %v3960_v7, %s3783_s25 }
 0x157   : > { %v945_v53 = vpop.permute.xlu1 %944 }
 0x158   : > { %v949_v49 = vpop.permute.xlu0 %948  ;;  %2905 = vmatpush3.bf16.msra.mxu1 %v945_v53  ;;  %v1026_v50 = vsel %vm557_vm3, %v943_v30, %v945_v53  ;;  %v3668_v53 = vld [vmem:[%s3935_s26 + $0x60] sm:$0xff] }
 0x159   : > { %3495 = vrot.lane.b32.xlu1 %v3998_v19, %s3782_s28  ;;  %1122 = vmatprep.subr.bf16.mxu0 %v1026_v50  ;;  %s3789_s28 = smov [#allocation6]  }
 0x15a   : > { %3510 = vrot.lane.b32.xlu0 %v3982_v13, %s3783_s25  ;;  %2906 = vmatprep.subr.bf16.mxu1 %v4410_v48 }
 0x15b   : > { %v941_v36 = vpop.permute.xlu1 %940 }
 0x15c   : > { %v955_v39 = vpop.permute.xlu0 %954  ;;  %v1025_v45 = vsel %vm557_vm3, %v941_v36, %v943_v30  ;;  %v3666_v30 = vld [vmem:[%s3935_s26 + $0x68] sm:$0xff] }
 0x15d   : > { %3505 = vrot.lane.b32.xlu1 %v3978_v12, %s3783_s25  ;;  %1123 = vmatpush1.bf16.msra.mxu0 %v1025_v45  ;;  %v1030_v9 = vsel %vm557_vm3, %v955_v39, %v4333_v6  ;;  %v1840_v31 = vpack.c.bf16 %v3666_v30, %v3665_v2 }
 0x15e   : > { %3520 = vrot.lane.b32.xlu0 %v3988_v14, %s3783_s25 }
 0x15f   : > { %v951_v8 = vpop.permute.xlu1 %950 }
 0x160   : > { %v961_v33 = vpop.permute.xlu0 %960  ;;  %2907 = vmatpush3.bf16.msra.mxu1 %v951_v8  ;;  %v1028_v44 = vsel %vm557_vm3, %v949_v49, %v951_v8 }
 0x161   : > { %3515 = vrot.lane.b32.xlu1 %v4426_v51, %s3783_s25  ;;  %1124 = vmatprep.subr.bf16.mxu0 %v1028_v44  ;;  %v1032_v6 = vsel %vm557_vm3, %v961_v33, %v4340_v35 }
 0x162   : > { %3530 = vrot.lane.b32.xlu0 %v3998_v19, %s3783_s25 }
 0x163   : > { %v947_v61 = vpop.permute.xlu1 %946  ;;  %1249 = vmatmul.mubr.bf16.vlgmr.msra.gmra.mrb[0].mxu1 %v4430_v3 }
 0x164   : > { %v4442_v63 = vpop.permute.xlu0 %1004  ;;  %v1027_v0 = vsel %vm557_vm3, %v947_v61, %v949_v49  ;;  %1256 = vmatprep.mubr.bf16.mxu1 %v4433_v56  ;;  %v1839_v49 = vpack.c.bf16 %v3668_v53, %v3667_v52 }
 0x165   : > { %3525 = vrot.lane.b32.xlu1 %v3996_v18, %s3783_s25  ;;  %1125 = vmatpush1.bf16.msra.mxu0 %v1027_v0 }
 0x166   : > { %1126 = vmatprep.subr.bf16.mxu0 %v1030_v9  ;;  %3540 = vrot.lane.b32.xlu0 %v3960_v7, %s3784_s27 }
 0x167   : > { %v953_v10 = vpop.permute.xlu1 %952  ;;  %2971 = vmatprep.subr.bf16.mxu1 %v4442_v63 }
 0x168   : > { %v965_v34 = vpop.permute.xlu0 %964  ;;  %v1029_v38 = vsel %vm557_vm3, %v953_v10, %v955_v39  ;;  %2972 = vmatpush3.bf16.msra.mxu1 %v4442_v63 }
 0x169   : > { %3535 = vrot.lane.b32.xlu1 %v4450_v11, %s3783_s25  ;;  %1127 = vmatpush1.bf16.msra.mxu0 %v1029_v38  ;;  %s3705_s25 = sshll.u32 %s3789_s28, 4  ;;  %s3706_s25 = int_to_ptr.vmem [resolvable:$false] %s3705_s25 }
 0x16a   : > { %1128 = vmatprep.subr.bf16.mxu0 %v1032_v6  ;;  %3550 = vrot.lane.b32.xlu0 %v3982_v13, %s3784_s27 }
 0x16b   : > { %v959_v28 = vpop.permute.xlu1 %958  ;;  %1257 = vmatmul.mubr.bf16.gmra.mrb[4].mxu1 %v4455_v4 }
 0x16c   : > { %v973_v37 = vpop.permute.xlu0 %972  ;;  %v1031_v15 = vsel %vm557_vm3, %v959_v28, %v961_v33  ;;  %2975 = vmatprep.mubr.msk.bf16.mxu1 %vm1103_vm8, %v4459_v62  ;;  %v1314_v28 = vld [vmem:[%s5035_s3] sm:$0xff] }
 0x16d   : > { %3545 = vrot.lane.b32.xlu1 %v3978_v12, %s3784_s27  ;;  %1129 = vmatpush1.bf16.msra.mxu0 %v1031_v15  ;;  %v1036_v20 = vsel %vm557_vm3, %v973_v37, %v4353_v59 }
 0x16e   : > { %3560 = vrot.lane.b32.xlu0 %v3988_v14, %s3784_s27 }
 0x16f   : > { %v967_v35 = vpop.permute.xlu1 %966 }
 0x170   : > { %v979_v16 = vpop.permute.xlu0 %978  ;;  %v1034_v17 = vsel %vm557_vm3, %v967_v35, %v4346_v55  ;;  %v1033_v5 = vsel %vm557_vm3, %v965_v34, %v967_v35 }
 0x171   : > { %3555 = vrot.lane.b32.xlu1 %v4426_v51, %s3784_s27  ;;  %1130 = vmatprep.subr.bf16.mxu0 %v1034_v17 }
 0x172   : > { %1131 = vmatpush1.bf16.msra.mxu0 %v1033_v5  ;;  %3570 = vrot.lane.b32.xlu0 %v3998_v19, %s3784_s27  ;;  %v1315_v5 = vld [vmem:[%s5035_s3 + $0x8] sm:$0xff] }
 0x173   : > { %1132 = vmatprep.subr.bf16.mxu0 %v1036_v20  ;;  %v4486_v55 = vpop.permute.xlu1 %1010 }
 0x174   : > { %v3351_v22 = vpop.permute.xlu0 %3350  ;;  %2973 = vmatprep.subr.bf16.mxu1 %v4486_v55 }
 0x175   : > { %3565 = vrot.lane.b32.xlu1 %v3996_v18, %s3784_s27  ;;  %2974 = vmatpush3.bf16.msra.mxu1 %v4486_v55  ;;  %v3353_v50 = vunpack.i.h.bf16 %v3351_v22  ;;  %v3352_v46 = vunpack.i.l.bf16 %v3351_v22 }
 0x176   : > { %3580 = vrot.lane.b32.xlu0 %v3960_v7, %s3785_s29  ;;  %1935 = vmatprep.subr.bf16.mxu1 %v1837_v41  ;;  %v1038_v7 = vsel %vm557_vm3, %v979_v16, %v4375_v27 }
 0x177   : > { %v971_v59 = vpop.permute.xlu1 %970  ;;  %v1464_v57 = vsel %vm467_vm1, %v3352_v46, %v3353_v50 }
 0x178   : > { %v3361_v29 = vpop.permute.xlu0 %3360  ;;  %v1035_v60 = vsel %vm557_vm3, %v971_v59, %v973_v37  ;;  %2976 = vmatmul.mubr.msk.bf16.vlgmr.msra.gmra.mrb[8].mxu1 %vm1103_vm8, %v4489_v23 }
 0x179   : > { %3575 = vrot.lane.b32.xlu1 %v4450_v11, %s3784_s27  ;;  %1133 = vmatpush1.bf16.msra.mxu0 %v1035_v60  ;;  %v3362_v54 = vunpack.i.l.bf16 %v3361_v29  ;;  %v3363_v27 = vunpack.i.h.bf16 %v3361_v29  ;;  %v2863_v29 = vld [vmem:[%s5035_s3 + $0x20] sm:$0xff]  ;;  %s365_s27 = sand.u32 1, %s3759_s14  }
 0x17a   : > { %1134 = vmatprep.subr.bf16.mxu0 %v1038_v7  ;;  %3590 = vrot.lane.b32.xlu0 %v3982_v13, %s3785_s29  ;;  %s4991_s20 = scalar_lea.sflag [#allocation5], %s365_s27 }
 0x17b   : > { %v977_v47 = vpop.permute.xlu1 %976  ;;  %1936 = vmatpush1.bf16.msra.mxu1 %v1836_v42  ;;  %1967 = vmatprep.mubr.bf16.mxu1 %v4498_v43  ;;  %v1463_v45 = vsel %vm467_vm1, %v3362_v54, %v3352_v46 }
 0x17c   : > { %v983_v36 = vpop.permute.xlu0 %982  ;;  %v1037_v39 = vsel %vm557_vm3, %v977_v47, %v979_v16  ;;  %1937 = vmatprep.subr.bf16.mxu1 %v1840_v31  ;;  %v2868_v47 = vld [vmem:[%s5036_s4 + $0x28] sm:$0xff] }
 0x17d   : > { %3585 = vrot.lane.b32.xlu1 %v3978_v12, %s3785_s29  ;;  %1135 = vmatpush1.bf16.msra.mxu0 %v1037_v39 }
 0x17e   : > { %3600 = vrot.lane.b32.xlu0 %v3988_v14, %s3785_s29 }
 0x17f   : > { %v3356_v13 = vpop.permute.xlu1 %3355  ;;  %1938 = vmatpush1.bf16.msra.mxu1 %v1839_v49  ;;  %v1350_v49 = vld [vmem:[%s5036_s4] sm:$0xff] }
 0x180   : > { %v3358_v8 = vunpack.i.h.bf16 %v3356_v13  ;;  %v3357_v33 = vunpack.i.l.bf16 %v3356_v13  ;;  %v3371_v44 = vpop.permute.xlu0 %3370 }
 0x181   : > { %3595 = vrot.lane.b32.xlu1 %v4426_v51, %s3785_s29  ;;  %v3373_v10 = vunpack.i.h.bf16 %v3371_v44  ;;  %v3372_v34 = vunpack.i.l.bf16 %v3371_v44 }
 0x182   : > { %v4523_v58 = vpack.c.bf16 %v3358_v8, %v3353_v50  ;;  %v1465_v12 = vsel %vm467_vm1, %v3363_v27, %v3357_v33  ;;  %3610 = vrot.lane.b32.xlu0 %v3998_v19, %s3785_s29  ;;  %v1466_v14 = vsel %vm467_vm1, %v3357_v33, %v3358_v8  ;;  %v1317_v27 = vld [vmem:[%s5035_s3 + $0x18] sm:$0xff] }
 0x183   : > { %v1842_v61 = vpack.c.bf16 %v1465_v12, %v1463_v45  ;;  %v985_v0 = vpop.permute.xlu1 %984  ;;  %v1843_v9 = vpack.c.bf16 %v1466_v14, %v1464_v57  ;;  %v1470_v16 = vsel %vm467_vm1, %v3372_v34, %v3373_v10 }
 0x184   : > { %v991_v38 = vpop.permute.xlu0 %990  ;;  %v1040_v6 = vsel %vm557_vm3, %v985_v0, %v4388_v24  ;;  %v1039_v51 = vsel %vm557_vm3, %v983_v36, %v985_v0 }
 0x185   : > { %3605 = vrot.lane.b32.xlu1 %v3996_v18, %s3785_s29  ;;  %1136 = vmatprep.subr.bf16.mxu0 %v1040_v6  ;;  %v1042_v19 = vsel %vm557_vm3, %v991_v38, %v4400_v1  ;;  %v2864_v18 = vld [vmem:[%s5035_s3 + $0x28] sm:$0xff] }
 0x186   : > { %1939 = vmatprep.subr.bf16.mxu1 %v1843_v9  ;;  %1137 = vmatpush1.bf16.msra.mxu0 %v1039_v51 }
 0x187   : > { %1940 = vmatpush1.bf16.msra.mxu1 %v1842_v61  ;;  %1138 = vmatprep.subr.bf16.mxu0 %v1042_v19  ;;  %v3366_v37 = vpop.permute.xlu1 %3365 }
 0x188   : > { %v3368_v15 = vunpack.i.h.bf16 %v3366_v37  ;;  %v3367_v24 = vunpack.i.l.bf16 %v3366_v37  ;;  %v3381_v35 = vpop.permute.xlu0 %3380  ;;  %1320 = vperm.xlu0 %3619, %v1314_v28   ;;  %v1316_v28 = vld [vmem:[%s5035_s3 + $0x10] sm:$0xff]  ;;  %v1353_v37 = vld [vmem:[%s5036_s4 + $0x18] sm:$0xff] }
 0x189   : > { %3615 = vrot.lane.b32.xlu1 %v4450_v11, %s3785_s29  ;;  %v1351_v11 = vld [vmem:[%s5036_s4 + $0x8] sm:$0xff]  ;;  %v3383_v60 = vunpack.i.h.bf16 %v3381_v35  ;;  %v3382_v2 = vunpack.i.l.bf16 %v3381_v35  ;;  %s3036_s29 = smul.u32 96, %s365_s27 }
 0x18a   : > { %v4545_v1 = vpack.c.bf16 %v3373_v10, %v3368_v15  ;;  %v1468_v17 = vsel %vm467_vm1, %v3367_v24, %v3368_v15  ;;  %v2867_v10 = vld [vmem:[%s5036_s4 + $0x20] sm:$0xff] }
 0x18b   : > { %v3376_v20 = vpop.permute.xlu1 %3375  ;;  %v1846_v40 = vpack.c.bf16 %v1470_v16, %v1468_v17  ;;  %v1509_v39 = vsel %vm1507_vm9, %v3382_v2, %v3383_v60  ;;  %s4932_s30 = scalar_lea.vmem [#allocation6], %s3036_s29  ;;  %s3707_s29 = scalar_lea.vmem %s3706_s25, 3072 }
 0x18c   : > { %v3378_v25 = vunpack.i.h.bf16 %v3376_v20  ;;  %v3377_v41 = vunpack.i.l.bf16 %v3376_v20  ;;  %v3391_v22 = vpop.permute.xlu0 %3390  ;;  %2151 = vperm.xlu0 %3619, %v2864_v18  }
 0x18d   : > { %1941 = vmatprep.subr.bf16.mxu1 %v1846_v40  ;;  %1325 = vperm.xlu1 %3620, %v1315_v5   ;;  %v3392_v30 = vunpack.i.l.bf16 %v3391_v22  ;;  %v3393_v52 = vunpack.i.h.bf16 %v3391_v22 }
 0x18e   : > { %v1469_v59 = vsel %vm467_vm1, %v3378_v25, %v3372_v34  ;;  %v1467_v26 = vsel %vm467_vm1, %v3377_v41, %v3367_v24  ;;  %v2866_v34 = vld [vmem:[%s5035_s3 + $0x38] sm:$0xff] }
 0x18f   : > { %v1845_v32 = vpack.c.bf16 %v1469_v59, %v1467_v26  ;;  %v989_v42 = vpop.permute.xlu1 %988  ;;  %v1508_v50 = vsel %vm1507_vm9, %v3392_v30, %v3382_v2  ;;  %v2870_v41 = vld [vmem:[%s5036_s4 + $0x38] sm:$0xff] }
 0x190   : > { %v995_v31 = vpop.permute.xlu0 %994  ;;  %v1041_v7 = vsel %vm557_vm3, %v989_v42, %v991_v38  ;;  %1361 = vperm.xlu0 %3619, %v1351_v11  }
 0x191   : > { %1139 = vmatpush1.bf16.msra.mxu0 %v1041_v7  ;;  %1942 = vmatpush1.bf16.msra.mxu1 %v1845_v32  ;;  %v1352_v7 = vld [vmem:[%s5036_s4 + $0x10] sm:$0xff] }
 0x192   : > { %2146 = vperm.xlu1 %3620, %v2863_v29  }
 0x193   : > { %v3386_v53 = vpop.permute.xlu1 %3385 }
 0x194   : > { %v3388_v46 = vunpack.i.h.bf16 %v3386_v53  ;;  %v3387_v54 = vunpack.i.l.bf16 %v3386_v53  ;;  %v3401_v36 = vpop.permute.xlu0 %3400  ;;  %2188 = vperm.xlu0 %3619, %v2868_v47  }
 0x195   : > { %v3403_v12 = vunpack.i.h.bf16 %v3401_v36  ;;  %v3402_v14 = vunpack.i.l.bf16 %v3401_v36 }
 0x196   : > { %v4571_v13 = vpack.c.bf16 %v3388_v46, %v3383_v60  ;;  %v1510_v45 = vsel %vm1507_vm9, %v3393_v52, %v3387_v54  ;;  %v1511_v8 = vsel %vm1507_vm9, %v3387_v54, %v3388_v46  ;;  %1356 = vperm.xlu1 %3620, %v1350_v49  }
 0x197   : > { %v1848_v33 = vpack.c.bf16 %v1510_v45, %v1508_v50  ;;  %v997_v44 = vpop.permute.xlu1 %996  ;;  %v1849_v57 = vpack.c.bf16 %v1511_v8, %v1509_v39  ;;  %v1515_v19 = vsel %vm1507_vm9, %v3402_v14, %v3403_v12 }
 0x198   : > { %v3411_v61 = vpop.permute.xlu0 %3410  ;;  %v1044_v0 = vsel %vm557_vm3, %v997_v44, %v4410_v48  ;;  %v1043_v9 = vsel %vm557_vm3, %v995_v31, %v997_v44  ;;  %1335 = vperm.xlu0 %3619, %v1317_v27  }
 0x199   : > { %1140 = vmatprep.subr.bf16.mxu0 %v1044_v0  ;;  %1943 = vmatprep.subr.bf16.mxu1 %v1849_v57  ;;  %v3413_v35 = vunpack.i.h.bf16 %v3411_v61  ;;  %v3412_v16 = vunpack.i.l.bf16 %v3411_v61 }
 0x19a   : > { %1141 = vmatpush1.bf16.msra.mxu0 %v1043_v9  ;;  %1944 = vmatpush1.bf16.msra.mxu1 %v1848_v33  ;;  %v2869_v33 = vld [vmem:[%s5036_s4 + $0x30] sm:$0xff] }
 0x19b   : > { %v3396_v38 = vpop.permute.xlu1 %3395  ;;  %2183 = vperm.xlu1 %3620, %v2867_v10   ;;  %v1553_v42 = vsel %vm647_vm5, %v3412_v16, %v3413_v35 }
 0x19c   : > { %v3398_v6 = vunpack.i.h.bf16 %v3396_v38  ;;  %v3397_v51 = vunpack.i.l.bf16 %v3396_v38  ;;  %v3421_v48 = vpop.permute.xlu0 %3420  ;;  %2161 = vperm.xlu0 %3619, %v2866_v34  }
 0x19d   : > { %1143 = vmatmul.mubr.bf16.vlgmr.msra.gmra.mrb[0].mxu0 %v4430_v3  ;;  %v3422_v18 = vunpack.i.l.bf16 %v3421_v48  ;;  %v2865_v3 = vld [vmem:[%s5035_s3 + $0x30] sm:$0xff] }
 0x19e   : > { %v4592_v15 = vpack.c.bf16 %v3403_v12, %v3398_v6  ;;  %v1513_v24 = vsel %vm1507_vm9, %v3397_v51, %v3398_v6  ;;  %1152 = vmatprep.mubr.bf16.mxu0 %v4433_v56  ;;  %v3423_v56 = vunpack.i.h.bf16 %v3421_v48 }
 0x19f   : > { %v3406_v17 = vpop.permute.xlu1 %3405  ;;  %v1852_v5 = vpack.c.bf16 %v1515_v19, %v1513_v24  ;;  %1330 = vperm.xlu1 %3620, %v1316_v28   ;;  %v1552_v59 = vsel %vm647_vm5, %v3422_v18, %v3412_v16 }
 0x1a0   : > { %v3408_v20 = vunpack.i.h.bf16 %v3406_v17  ;;  %v3407_v40 = vunpack.i.l.bf16 %v3406_v17  ;;  %v3431_v25 = vpop.permute.xlu0 %3430  ;;  %1371 = vperm.xlu0 %3619, %v1353_v37   ;;  %v3669_v17 = vld [vmem:[%s3935_s26 + $0x10] sm:$0xff] }
 0x1a1   : > { %1945 = vmatprep.subr.bf16.mxu1 %v1852_v5  ;;  %v3433_v29 = vunpack.i.h.bf16 %v3431_v25  ;;  %v3432_v60 = vunpack.i.l.bf16 %v3431_v25  ;;  %v3670_v5 = vld [vmem:[%s3935_s26 + $0x30] sm:$0xff] }
 0x1a2   : > { %v1514_v22 = vsel %vm1507_vm9, %v3408_v20, %v3402_v14  ;;  %v1512_v11 = vsel %vm1507_vm9, %v3407_v40, %v3397_v51  ;;  %v1838_v20 = vpack.c.bf16 %v3670_v5, %v3669_v17 }
 0x1a3   : > { %v1851_v26 = vpack.c.bf16 %v1514_v22, %v1512_v11  ;;  %v3416_v32 = vpop.permute.xlu1 %3415  ;;  %2156 = vperm.xlu1 %3620, %v2865_v3  }
 0x1a4   : > { %v3418_v2 = vunpack.i.h.bf16 %v3416_v32  ;;  %v3417_v30 = vunpack.i.l.bf16 %v3416_v32  ;;  %v3436_v31 = vpop.permute.xlu0 %3435  ;;  %2198 = vperm.xlu0 %3619, %v2870_v41  }
 0x1a5   : > { %v3438_v47 = vunpack.i.h.bf16 %v3436_v31  ;;  %1946 = vmatpush1.bf16.msra.mxu1 %v1851_v26  ;;  %1153 = vmatmul.mubr.bf16.gmra.mrb[4].mxu0 %v4455_v4  ;;  %v3437_v49 = vunpack.i.l.bf16 %v3436_v31  ;;  %v1559_v4 = vsel %vm647_vm5, %v3432_v60, %v3433_v29  ;;  %v3672_v31 = vld [vmem:[%s3935_s26 + $0x70] sm:$0xff] }
 0x1a6   : > { %v4610_v52 = vpack.c.bf16 %v3418_v2, %v3413_v35  ;;  %v1554_v53 = vsel %vm647_vm5, %v3423_v56, %v3417_v30  ;;  %v1555_v50 = vsel %vm647_vm5, %v3417_v30, %v3418_v2  ;;  %1195 = vmatprep.mubr.bf16.mxu0 %v3781_v21  ;;  %v3671_v30 = vld [vmem:[%s3935_s26 + $0x50] sm:$0xff]  ;;  %s2761_s26 = sshll.u32 %s4932_s30, 4  ;;  %s4974_s26 = int_to_ptr.vmem [resolvable:$true] %s2761_s26 }
 0x1a7   : > { %v1854_v46 = vpack.c.bf16 %v1554_v53, %v1552_v59  ;;  %v3426_v54 = vpop.permute.xlu1 %3425  ;;  %v1855_v36 = vpack.c.bf16 %v1555_v50, %v1553_v42  ;;  %1366 = vperm.xlu1 %3620, %v1352_v7   ;;  %v1558_v39 = vsel %vm647_vm5, %v3438_v47, %v3432_v60  ;;  %v1841_v7 = vpack.c.bf16 %v3672_v31, %v3671_v30  ;;  %s3701_s21 = scalar_lea.vmem %s4974_s26, 1536  ;;  %p3708_p2 = scmp.lt.s32.totalorder %s4974_s26, %s3706_s25 }
 0x1a8   : > { %v3428_v27 = vunpack.i.h.bf16 %v3426_v54  ;;  %v3427_v45 = vunpack.i.l.bf16 %v3426_v54  ;;  %v3441_v8 = vpop.permute.xlu0 %3440  ;;  %p3702_p6 = scmp.ne.s32.totalorder %s4974_s26, %s3701_s21  ;;  %p3709_p3 = scmp.lt.s32.totalorder %s3707_s29, %s3701_s21 }
 0x1a9   : > { %1947 = vmatprep.subr.bf16.mxu1 %v1855_v36  ;;  %v3443_v38 = vunpack.i.h.bf16 %v3441_v8  ;;  %v3442_v6 = vunpack.i.l.bf16 %v3441_v8 }
 0x1aa   : > { %v4620_v44 = vpack.c.bf16 %v3433_v29, %v3428_v27  ;;  %v1556_v57 = vsel %vm647_vm5, %v3437_v49, %v3427_v45  ;;  %1948 = vmatpush1.bf16.msra.mxu1 %v1854_v46  ;;  %v1557_v12 = vsel %vm647_vm5, %v3427_v45, %v3428_v27  ;;  %p3703_p10 = pnand %p3702_p6, %p5065_p9  ;;  %p3710_p4 = por %p3709_p3, %p3708_p2 }
 0x1ab   : > { %v1857_v14 = vpack.c.bf16 %v1558_v39, %v1556_v57  ;;  %v1003_v61 = vpop.permute.xlu1 %1002  ;;  %v1858_v0 = vpack.c.bf16 %v1559_v4, %v1557_v12  ;;  %2193 = vperm.xlu1 %3620, %v2869_v33   ;;  %v1597_v24 = vsel %vm737_vm7, %v3442_v6, %v3443_v38 }
 0x1ac   : > { %v1046_v9 = vsel %vm557_vm3, %v1003_v61, %v4442_v63  ;;  %v1009_v10 = vpop.permute.xlu0 %1008  ;;  %p3704_p12 = pneg %p3703_p10 }
 0x1ad   : > { %1163 = vmatprep.subr.bf16.mxu0 %v1046_v9  ;;  %1949 = vmatprep.subr.bf16.mxu1 %v1858_v0  ;;  %v1048_v48 = vsel %vm557_vm3, %v1009_v10, %v4486_v55 }
 0x1ae   : > { %1950 = vmatpush1.bf16.msra.mxu1 %v1857_v14  ;;  %p3711_p7 = pnand %p3710_p4, %p3704_p12 }
 0x1af   : > { %v1001_v34 = vpop.permute.xlu1 %1000 }
 0x1b0   : > { %v1045_v51 = vsel %vm557_vm3, %v1001_v34, %v1003_v61 }
 0x1b1   : > { %1164 = vmatpush1.bf16.msra.mxu0 %v1045_v51 }
 0x1b2   : > { %1165 = vmatprep.subr.bf16.mxu0 %v1048_v48 }
 0x1b3   : > { %v3446_v19 = vpop.permute.xlu1 %3445 }
 0x1b4   : > { %v3448_v28 = vunpack.i.h.bf16 %v3446_v19  ;;  %v3447_v37 = vunpack.i.l.bf16 %v3446_v19  ;;  %v1007_v63 = vpop.permute.xlu0 %1006 }
 0x1b5   : > { %v1047_v35 = vsel %vm557_vm3, %v1007_v63, %v1009_v10 }
 0x1b6   : > { %v1862_v16 = vpack.c.bf16 %v3448_v28, %v3443_v38  ;;  %1166 = vmatpush1.bf16.msra.mxu0 %v1047_v35  ;;  %v1599_v18 = vsel %vm737_vm7, %v3447_v37, %v3448_v28 }
 0x1b7   : > { %v3451_v40 = vpop.permute.xlu1 %3450  ;;  %v1861_v25 = vpack.c.bf16 %v1599_v18, %v1597_v24 }
 0x1b8   : > { %v3453_v3 = vunpack.i.h.bf16 %v3451_v40  ;;  %v3452_v55 = vunpack.i.l.bf16 %v3451_v40  ;;  %2924 = vmatprep.subr.bf16.mxu0 %v1862_v16  ;;  %v3461_v41 = vpop.permute.xlu0 %3460 }
 0x1b9   : > { %v3463_v56 = vunpack.i.h.bf16 %v3461_v41  ;;  %v3462_v22 = vunpack.i.l.bf16 %v3461_v41  ;;  %1951 = vmatprep.subr.bf16.mxu1 %v1861_v25  ;;  %2849 = vmatmul.mubr.msk.bf16.vlgmr.msra.gmra.mrb[0].mxu0 %vm1103_vm8, %v4459_v62 }
 0x1ba   : > { %v1596_v11 = vsel %vm737_vm7, %v3452_v55, %v3442_v6  ;;  %v1598_v59 = vsel %vm737_vm7, %v3453_v3, %v3447_v37  ;;  %2925 = vmatpush3.bf16.msra.mxu0 %v1838_v20  ;;  %1205 = vmatprep.mubr.bf16.mxu0 %v3781_v21 }
 0x1bb   : > { %v1860_v26 = vpack.c.bf16 %v1598_v59, %v1596_v11  ;;  %v3456_v32 = vpop.permute.xlu1 %3455  ;;  %v1603_v2 = vsel %vm737_vm7, %v3462_v22, %v3463_v56 }
 0x1bc   : > { %v3458_v42 = vunpack.i.h.bf16 %v3456_v32  ;;  %v3457_v29 = vunpack.i.l.bf16 %v3456_v32  ;;  %v3471_v60 = vpop.permute.xlu0 %3470 }
 0x1bd   : > { %1952 = vmatpush1.bf16.msra.mxu1 %v1860_v26  ;;  %v3473_v50 = vunpack.i.h.bf16 %v3471_v60  ;;  %v3472_v46 = vunpack.i.l.bf16 %v3471_v60 }
 0x1be   : > { %v1865_v47 = vpack.c.bf16 %v3463_v56, %v3458_v42  ;;  %v1601_v62 = vsel %vm737_vm7, %v3457_v29, %v3458_v42 }
 0x1bf   : > { %v3466_v53 = vpop.permute.xlu1 %3465  ;;  %v1864_v49 = vpack.c.bf16 %v1603_v2, %v1601_v62  ;;  %v1642_v9 = vsel %vm1640_vm10, %v3472_v46, %v3473_v50 }
 0x1c0   : > { %v3468_v54 = vunpack.i.h.bf16 %v3466_v53  ;;  %v3467_v36 = vunpack.i.l.bf16 %v3466_v53  ;;  %2926 = vmatprep.subr.bf16.mxu0 %v1865_v47  ;;  %v3481_v39 = vpop.permute.xlu0 %3480 }
 0x1c1   : > { %v3482_v27 = vunpack.i.l.bf16 %v3481_v39  ;;  %1953 = vmatprep.subr.bf16.mxu1 %v1864_v49  ;;  %2927 = vmatpush3.bf16.msra.mxu0 %v1841_v7  ;;  %v3483_v4 = vunpack.i.h.bf16 %v3481_v39 }
 0x1c2   : > { %v1602_v45 = vsel %vm737_vm7, %v3468_v54, %v3462_v22  ;;  %v1600_v8 = vsel %vm737_vm7, %v3467_v36, %v3457_v29  ;;  %2850 = vmatmul.mubr.msk.bf16.gmra.mrb[4].mxu0 %vm1103_vm8, %v4489_v23 }
 0x1c3   : > { %v1863_v33 = vpack.c.bf16 %v1602_v45, %v1600_v8  ;;  %v3476_v57 = vpop.permute.xlu1 %3475  ;;  %2073 = vmatprep.mubr.bf16.mxu0 %v4498_v43  ;;  %v1641_v12 = vsel %vm1640_vm10, %v3482_v27, %v3472_v46 }
 0x1c4   : > { %v3478_v14 = vunpack.i.h.bf16 %v3476_v57  ;;  %v3477_v61 = vunpack.i.l.bf16 %v3476_v57  ;;  %v3491_v0 = vpop.permute.xlu0 %3490 }
 0x1c5   : > { %v3493_v10 = vunpack.i.h.bf16 %v3491_v0  ;;  %v3492_v34 = vunpack.i.l.bf16 %v3491_v0  ;;  %1954 = vmatpush1.bf16.msra.mxu1 %v1863_v33 }
 0x1c6   : > { %v1868_v38 = vpack.c.bf16 %v3478_v14, %v3473_v50  ;;  %v1643_v6 = vsel %vm1640_vm10, %v3483_v4, %v3477_v61  ;;  %v1644_v51 = vsel %vm1640_vm10, %v3477_v61, %v3478_v14 }
 0x1c7   : > { %v1866_v23 = vpack.c.bf16 %v1643_v6, %v1641_v12  ;;  %v3486_v48 = vpop.permute.xlu1 %3485  ;;  %v1867_v19 = vpack.c.bf16 %v1644_v51, %v1642_v9  ;;  %v1648_v63 = vsel %vm1640_vm10, %v3492_v34, %v3493_v10 }
 0x1c8   : > { %v3488_v28 = vunpack.i.h.bf16 %v3486_v48  ;;  %v3487_v43 = vunpack.i.l.bf16 %v3486_v48  ;;  %2928 = vmatprep.subr.bf16.mxu0 %v1868_v38  ;;  %v3501_v37 = vpop.permute.xlu0 %3500 }
 0x1c9   : > { %1955 = vmatprep.subr.bf16.mxu1 %v1867_v19  ;;  %2929 = vmatpush3.bf16.msra.mxu0 %v4523_v58  ;;  %v3503_v17 = vunpack.i.h.bf16 %v3501_v37  ;;  %v3502_v5 = vunpack.i.l.bf16 %v3501_v37 }
 0x1ca   : > { %v1871_v24 = vpack.c.bf16 %v3493_v10, %v3488_v28  ;;  %1956 = vmatpush1.bf16.msra.mxu1 %v1866_v23  ;;  %v1646_v35 = vsel %vm1640_vm10, %v3487_v43, %v3488_v28 }
 0x1cb   : > { %v3496_v16 = vpop.permute.xlu1 %3495  ;;  %v1870_v18 = vpack.c.bf16 %v1648_v63, %v1646_v35  ;;  %v1699_v42 = vsel %vm1697_vm11, %v3502_v5, %v3503_v17 }
 0x1cc   : > { %v3498_v20 = vunpack.i.h.bf16 %v3496_v16  ;;  %v3497_v40 = vunpack.i.l.bf16 %v3496_v16  ;;  %2930 = vmatprep.subr.bf16.mxu0 %v1871_v24  ;;  %v3511_v25 = vpop.permute.xlu0 %3510 }
 0x1cd   : > { %v3512_v3 = vunpack.i.l.bf16 %v3511_v25  ;;  %1957 = vmatprep.subr.bf16.mxu1 %v1870_v18  ;;  %2931 = vmatpush3.bf16.msra.mxu0 %v4545_v1  ;;  %v3513_v41 = vunpack.i.h.bf16 %v3511_v25 }
 0x1ce   : > { %v1647_v55 = vsel %vm1640_vm10, %v3498_v20, %v3492_v34  ;;  %v1645_v58 = vsel %vm1640_vm10, %v3497_v40, %v3487_v43 }
 0x1cf   : > { %v1869_v56 = vpack.c.bf16 %v1647_v55, %v1645_v58  ;;  %v3506_v22 = vpop.permute.xlu1 %3505  ;;  %v1698_v11 = vsel %vm1697_vm11, %v3512_v3, %v3502_v5 }
 0x1d0   : > { %v3508_v59 = vunpack.i.h.bf16 %v3506_v22  ;;  %v3507_v26 = vunpack.i.l.bf16 %v3506_v22  ;;  %v3521_v32 = vpop.permute.xlu0 %3520 }
 0x1d1   : > { %1958 = vmatpush1.bf16.msra.mxu1 %v1869_v56  ;;  %v3523_v31 = vunpack.i.h.bf16 %v3521_v32  ;;  %v3522_v7 = vunpack.i.l.bf16 %v3521_v32 }
 0x1d2   : > { %v1701_v29 = vsel %vm1697_vm11, %v3513_v41, %v3507_v26  ;;  %v1702_v60 = vsel %vm1697_vm11, %v3507_v26, %v3508_v59 }
 0x1d3   : > { %v1872_v1 = vpack.c.bf16 %v1701_v29, %v1698_v11  ;;  %v3516_v2 = vpop.permute.xlu1 %3515  ;;  %v1873_v30 = vpack.c.bf16 %v1702_v60, %v1699_v42  ;;  %v1705_v33 = vsel %vm1697_vm11, %v3522_v7, %v3523_v31 }
 0x1d4   : > { %v3518_v47 = vunpack.i.h.bf16 %v3516_v2  ;;  %v3517_v62 = vunpack.i.l.bf16 %v3516_v2  ;;  %v3531_v53 = vpop.permute.xlu0 %3530 }
 0x1d5   : > { %v3532_v49 = vunpack.i.l.bf16 %v3531_v53  ;;  %1959 = vmatprep.subr.bf16.mxu1 %v1873_v30  ;;  %v3533_v50 = vunpack.i.h.bf16 %v3531_v53 }
 0x1d6   : > { %1960 = vmatpush1.bf16.msra.mxu1 %v1872_v1  ;;  %v1700_v46 = vsel %vm1697_vm11, %v3503_v17, %v3517_v62  ;;  %v1703_v54 = vsel %vm1697_vm11, %v3508_v59, %v3518_v47 }
 0x1d7   : > { %v3526_v36 = vpop.permute.xlu1 %3525  ;;  %v1874_v39 = vpack.c.bf16 %v1703_v54, %v1700_v46  ;;  %v1704_v27 = vsel %vm1697_vm11, %v3532_v49, %v3522_v7  ;;  %v3629_v54 = vld [vmem:[#allocation3 + $0x30] ss:$12 sps:$4 sm:$0xff]  }
 0x1d8   : > { %v3528_v45 = vunpack.i.h.bf16 %v3526_v36  ;;  %v3527_v8 = vunpack.i.l.bf16 %v3526_v36  ;;  %v3541_v4 = vpop.permute.xlu0 %3540 }
 0x1d9   : > { %2932 = vmatprep.subr.bf16.mxu0 %v1874_v39  ;;  %v3543_v9 = vunpack.i.h.bf16 %v3541_v4  ;;  %v3542_v10 = vunpack.i.l.bf16 %v3541_v4 }
 0x1da   : > { %v1707_v57 = vsel %vm1697_vm11, %v3533_v50, %v3527_v8  ;;  %2933 = vmatpush3.bf16.msra.mxu0 %v4571_v13  ;;  %v1708_v12 = vsel %vm1697_vm11, %v3527_v8, %v3528_v45 }
 0x1db   : > { %v1875_v14 = vpack.c.bf16 %v1707_v57, %v1704_v27  ;;  %v3536_v61 = vpop.permute.xlu1 %3535  ;;  %v1876_v0 = vpack.c.bf16 %v1708_v12, %v1705_v33  ;;  %v1756_v35 = vsel %vm1754_vm12, %v3542_v10, %v3543_v9  ;;  %v3632_v27 = vld [vmem:[#allocation3 + $0x4c] ss:$12 sps:$4 sm:$0xff]  }
 0x1dc   : > { %v3538_v34 = vunpack.i.h.bf16 %v3536_v61  ;;  %v3537_v38 = vunpack.i.l.bf16 %v3536_v61  ;;  %v3551_v6 = vpop.permute.xlu0 %3550 }
 0x1dd   : > { %v3552_v51 = vunpack.i.l.bf16 %v3551_v6  ;;  %1961 = vmatprep.subr.bf16.mxu1 %v1876_v0  ;;  %v3553_v23 = vunpack.i.h.bf16 %v3551_v6 }
 0x1de   : > { %1962 = vmatpush1.bf16.msra.mxu1 %v1875_v14  ;;  %v1706_v48 = vsel %vm1697_vm11, %v3523_v31, %v3537_v38  ;;  %v1709_v19 = vsel %vm1697_vm11, %v3528_v45, %v3538_v34 }
 0x1df   : > { %v3546_v13 = vpop.permute.xlu1 %3545  ;;  %v1877_v28 = vpack.c.bf16 %v1709_v19, %v1706_v48  ;;  %v1755_v43 = vsel %vm1754_vm12, %v3552_v51, %v3542_v10 }
 0x1e0   : > { %v3548_v37 = vunpack.i.h.bf16 %v3546_v13  ;;  %v3547_v63 = vunpack.i.l.bf16 %v3546_v13  ;;  %v3561_v24 = vpop.permute.xlu0 %3560  ;;  %v3634_v13 = vld [vmem:[#allocation3 + $0x48] ss:$12 sps:$4 sm:$0xff]  }
 0x1e1   : > { %2934 = vmatprep.subr.bf16.mxu0 %v1877_v28  ;;  %v3563_v40 = vunpack.i.h.bf16 %v3561_v24  ;;  %v3562_v25 = vunpack.i.l.bf16 %v3561_v24 }
 0x1e2   : > { %v1758_v16 = vsel %vm1754_vm12, %v3553_v23, %v3547_v63  ;;  %2935 = vmatpush3.bf16.msra.mxu0 %v4592_v15  ;;  %v1759_v18 = vsel %vm1754_vm12, %v3547_v63, %v3548_v37 }
 0x1e3   : > { %v1878_v17 = vpack.c.bf16 %v1758_v16, %v1755_v43  ;;  %v3556_v5 = vpop.permute.xlu1 %3555  ;;  %v1879_v20 = vpack.c.bf16 %v1759_v18, %v1756_v35  ;;  %v1762_v60 = vsel %vm1754_vm12, %v3562_v25, %v3563_v40 }
 0x1e4   : > { %v3558_v3 = vunpack.i.h.bf16 %v3556_v5  ;;  %v3557_v55 = vunpack.i.l.bf16 %v3556_v5  ;;  %v3571_v58 = vpop.permute.xlu0 %3570 }
 0x1e5   : > { %v3572_v41 = vunpack.i.l.bf16 %v3571_v58  ;;  %1963 = vmatprep.subr.bf16.mxu1 %v1879_v20  ;;  %v3573_v56 = vunpack.i.h.bf16 %v3571_v58  ;;  %v3635_v58 = vld [vmem:[#allocation3 + $0x38] ss:$12 sps:$4 sm:$0xff]  }
 0x1e6   : > { %1964 = vmatpush1.bf16.msra.mxu1 %v1878_v17  ;;  %v1757_v22 = vsel %vm1754_vm12, %v3543_v9, %v3557_v55  ;;  %v1760_v11 = vsel %vm1754_vm12, %v3548_v37, %v3558_v3 }
 0x1e7   : > { %v3566_v59 = vpop.permute.xlu1 %3565  ;;  %v1880_v15 = vpack.c.bf16 %v1760_v11, %v1757_v22  ;;  %v1761_v26 = vsel %vm1754_vm12, %v3572_v41, %v3562_v25  ;;  %v3636_v11 = vld [vmem:[#allocation3 + $0x50] ss:$12 sps:$4 sm:$0xff]  }
 0x1e8   : > { %v3568_v32 = vunpack.i.h.bf16 %v3566_v59  ;;  %v3567_v42 = vunpack.i.l.bf16 %v3566_v59  ;;  %v3581_v29 = vpop.permute.xlu0 %3580 }
 0x1e9   : > { %2936 = vmatprep.subr.bf16.mxu0 %v1880_v15  ;;  %v3583_v47 = vunpack.i.h.bf16 %v3581_v29  ;;  %v3582_v62 = vunpack.i.l.bf16 %v3581_v29 }
 0x1ea   : > { %v1764_v1 = vsel %vm1754_vm12, %v3573_v56, %v3567_v42  ;;  %2937 = vmatpush3.bf16.msra.mxu0 %v4610_v52  ;;  %v1765_v2 = vsel %vm1754_vm12, %v3567_v42, %v3568_v32 }
 0x1eb   : > { %v1881_v30 = vpack.c.bf16 %v1764_v1, %v1761_v26  ;;  %v3576_v31 = vpop.permute.xlu1 %3575  ;;  %v1882_v7 = vpack.c.bf16 %v1765_v2, %v1762_v60  ;;  %v1813_v14 = vsel %vm1811_vm13, %v3582_v62, %v3583_v47 }
 0x1ec   : > { %v3578_v53 = vunpack.i.h.bf16 %v3576_v31  ;;  %v3577_v49 = vunpack.i.l.bf16 %v3576_v31  ;;  %v3591_v50 = vpop.permute.xlu0 %3590 }
 0x1ed   : > { %v3592_v46 = vunpack.i.l.bf16 %v3591_v50  ;;  %1965 = vmatprep.subr.bf16.mxu1 %v1882_v7  ;;  %v3593_v36 = vunpack.i.h.bf16 %v3591_v50 }
 0x1ee   : > { %1966 = vmatpush1.bf16.msra.mxu1 %v1881_v30  ;;  %v1763_v39 = vsel %vm1754_vm12, %v3563_v40, %v3577_v49  ;;  %v1766_v52 = vsel %vm1754_vm12, %v3568_v32, %v3578_v53 }
 0x1ef   : > { %v3586_v45 = vpop.permute.xlu1 %3585  ;;  %v1883_v8 = vpack.c.bf16 %v1766_v52, %v1763_v39  ;;  %v1812_v4 = vsel %vm1811_vm13, %v3592_v46, %v3582_v62 }
 0x1f0   : > { %v3588_v33 = vunpack.i.h.bf16 %v3586_v45  ;;  %v3587_v57 = vunpack.i.l.bf16 %v3586_v45  ;;  %v3601_v12 = vpop.permute.xlu0 %3600 }
 0x1f1   : > { %1968 = vmatmul.mubr.bf16.vlgmr.msra.gmra.mrb[12].mxu1 %v3629_v54  ;;  %2938 = vmatprep.subr.bf16.mxu0 %v1883_v8  ;;  %v3603_v38 = vunpack.i.h.bf16 %v3601_v12  ;;  %v3602_v6 = vunpack.i.l.bf16 %v3601_v12 }
 0x1f2   : > { %v1815_v61 = vsel %vm1811_vm13, %v3593_v36, %v3587_v57  ;;  %2939 = vmatpush3.bf16.msra.mxu0 %v4620_v44  ;;  %v1816_v0 = vsel %vm1811_vm13, %v3587_v57, %v3588_v33  ;;  %1977 = vmatprep.mubr.bf16.mxu1 %v3632_v27 }
 0x1f3   : > { %v1884_v9 = vpack.c.bf16 %v1815_v61, %v1812_v4  ;;  %v3596_v10 = vpop.permute.xlu1 %3595  ;;  %v1885_v34 = vpack.c.bf16 %v1816_v0, %v1813_v14  ;;  %v1819_v18 = vsel %vm1811_vm13, %v3602_v6, %v3603_v38 }
 0x1f4   : > { %v3598_v51 = vunpack.i.h.bf16 %v3596_v10  ;;  %v3597_v23 = vunpack.i.l.bf16 %v3596_v10  ;;  %v3611_v48 = vpop.permute.xlu0 %3610 }
 0x1f5   : > { %v3612_v19 = vunpack.i.l.bf16 %v3611_v48  ;;  %1988 = vmatprep.subr.bf16.mxu1 %v1885_v34  ;;  %2074 = vmatmul.mubr.bf16.vlgmr.msra.gmra.mrb[8].mxu0 %v3629_v54  ;;  %v3613_v28 = vunpack.i.h.bf16 %v3611_v48 }
 0x1f6   : > { %1989 = vmatpush1.bf16.msra.mxu1 %v1884_v9  ;;  %v1814_v43 = vsel %vm1811_vm13, %v3583_v47, %v3597_v23  ;;  %v1817_v44 = vsel %vm1811_vm13, %v3588_v33, %v3598_v51  ;;  %2081 = vmatprep.mubr.bf16.mxu0 %v3632_v27 }
 0x1f7   : > { %v3606_v37 = vpop.permute.xlu1 %3605  ;;  %v1886_v63 = vpack.c.bf16 %v1817_v44, %v1814_v43  ;;  %v1818_v24 = vsel %vm1811_vm13, %v3612_v19, %v3602_v6 }
 0x1f8   : > { %v3608_v35 = vunpack.i.h.bf16 %v3606_v37  ;;  %v3607_v16 = vunpack.i.l.bf16 %v3606_v37 }
 0x1f9   : > { %1978 = vmatmul.mubr.bf16.gmra.mrb[16].mxu1 %v3634_v13  ;;  %2979 = vmatprep.subr.bf16.mxu0 %v1886_v63 }
 0x1fa   : > { %v1821_v17 = vsel %vm1811_vm13, %v3613_v28, %v3607_v16  ;;  %2980 = vmatpush3.bf16.msra.mxu0 %v1886_v63  ;;  %v1822_v5 = vsel %vm1811_vm13, %v3607_v16, %v3608_v35  ;;  %2020 = vmatprep.mubr.bf16.mxu1 %v3781_v21 }
 0x1fb   : > { %v1887_v20 = vpack.c.bf16 %v1821_v17, %v1818_v24  ;;  %v3616_v40 = vpop.permute.xlu1 %3615  ;;  %v1888_v25 = vpack.c.bf16 %v1822_v5, %v1819_v18 }
 0x1fc   : > { %v3618_v3 = vunpack.i.h.bf16 %v3616_v40  ;;  %v3617_v55 = vunpack.i.l.bf16 %v3616_v40 }
 0x1fd   : > { %1990 = vmatprep.subr.bf16.mxu1 %v1888_v25  ;;  %2082 = vmatmul.mubr.bf16.gmra.mrb[12].mxu0 %v3634_v13 }
 0x1fe   : > { %1991 = vmatpush1.bf16.msra.mxu1 %v1887_v20  ;;  %v1820_v41 = vsel %vm1811_vm13, %v3603_v38, %v3617_v55  ;;  %v1823_v56 = vsel %vm1811_vm13, %v3608_v35, %v3618_v3  ;;  %2983 = vmatprep.mubr.msk.bf16.mxu0 %vm1103_vm8, %v3635_v58 }
 0x1ff   : > { %v1889_v22 = vpack.c.bf16 %v1823_v56, %v1820_v41 }
 0x201   : > { %2859 = vmatmul.mubr.msk.bf16.vlgmr.msra.gmra.mrb[12].mxu1 %vm1103_vm8, %v3635_v58  ;;  %2981 = vmatprep.subr.bf16.mxu0 %v1889_v22 }
 0x202   : > { %2982 = vmatpush3.bf16.msra.mxu0 %v1889_v22  ;;  %2030 = vmatprep.mubr.bf16.mxu1 %v3781_v21 }
 0x205   : > { %2984 = vmatmul.mubr.msk.bf16.vlgmr.msra.gmra.mrb[16].mxu0 %vm1103_vm8, %v3636_v11 }
 0x207   : > { %v1321_v15 = vpop.permute.xlu0 %1320 }
 0x209   : > { %2860 = vmatmul.mubr.msk.bf16.gmra.mrb[16].mxu1 %vm1103_vm8, %v3636_v11 }
 0x20b   : > { %v4706_v32 = vpop.permute.xlu0 %2151 }
 0x20c   : > { %v1326_v59 = vpop.permute.xlu1 %1325 }
 0x20f   : > { %v1362_v1 = vpop.permute.xlu0 %1361 }
 0x211   : > { %v4704_v26 = vpop.permute.xlu1 %2146 }
 0x213   : > { %v4710_v21 = vpop.permute.xlu0 %2188 }
 0x215   : > { %v1357_v42 = vpop.permute.xlu1 %1356 }
 0x217   : > { %v1336_v39 = vpop.permute.xlu0 %1335 }
 0x21a   : > { %v4708_v47 = vpop.permute.xlu1 %2183 }
 0x21b   : > { %v4714_v27 = vpop.permute.xlu0 %2161 }
 0x21e   : > { %v1331_v54 = vpop.permute.xlu1 %1330 }
 0x21f   : > { %v1372_v34 = vpop.permute.xlu0 %1371 }
 0x222   : > { %v4712_v52 = vpop.permute.xlu1 %2156 }
 0x226   : > { %v1367_v12 = vpop.permute.xlu1 %1366 }
 0x236   : > { %v2908_v29 = vpop.f32.mrb[0].mxu1 }
 0x237   : > { %v2909_v60 = vpop.f32.mrb[1].mxu1 }
 0x238   : > { %v2910_v2 = vadd.f32 %v2909_v60, %v2908_v29  ;;  %v2911_v30 = vpop.f32.mrb[2].mxu1 }
 0x239   : > { %v2912_v31 = vpop.f32.mrb[3].mxu1 }
 0x23a   : > { %v2913_v7 = vadd.f32 %v2912_v31, %v2911_v30 }
 0x23e   : > { %v2914_v62 = vpop.f32.mrb[4].mxu1 }
 0x23f   : > { %v2915_v53 = vpop.f32.mrb[5].mxu1 }
 0x240   : > { %v2916_v49 = vadd.f32 %v2915_v53, %v2914_v62  ;;  %v2917_v50 = vpop.f32.mrb[6].mxu1 }
 0x241   : > { %v2918_v46 = vpop.f32.mrb[7].mxu1 }
 0x242   : > { %v2919_v36 = vadd.f32 %v2918_v46, %v2917_v50 }
 0x24b   : > { %v2977_v45 = vpop.f32.mrb[8].mxu1 }
 0x24c   : > { %v1308_v8 = vadd.f32 %v2977_v45, %v2916_v49  ;;  %v1299_v4 = vpop.f32.mrb[9].mxu1 }
 0x24d   : > { %v1300_v33 = vadd.f32 %v2910_v2, %v1299_v4  ;;  %v2978_v57 = vpop.f32.mrb[10].mxu1 }
 0x24e   : > { %v1311_v14 = vadd.f32 %v2978_v57, %v2919_v36  ;;  %v1302_v61 = vpop.f32.mrb[11].mxu1  ;;  %v1346_v0 = vmul.f32 %v1331_v54, %v1308_v8 }
 0x24f   : > { %v1340_v9 = vmul.f32 %v1321_v15, %v1300_v33  ;;  %v1303_v10 = vadd.f32 %v2913_v7, %v1302_v61 }
 0x250   : > { %v1349_v38 = vmul.f32 %v1336_v39, %v1311_v14  ;;  %v1382_v6 = vadd.f32 %v1367_v12, %v1346_v0 }
 0x251   : > { %v1376_v51 = vadd.f32 %v1357_v42, %v1340_v9  ;;  %v1343_v23 = vmul.f32 %v1326_v59, %v1303_v10 }
 0x252   : > { %v1385_v48 = vadd.f32 %v1372_v34, %v1349_v38  ;;  %v1394_v19 = vmax.f32 %v1382_v6, 0.0  ;;  %v2276_v6 = vlaneseq }
 0x253   : > { %v1388_v13 = vmax.f32 %v1376_v51, 0.0  ;;  %v1379_v28 = vadd.f32 %v1362_v1, %v1343_v23 }
 0x254   : > { %v1397_v43 = vmax.f32 %v1385_v48, 0.0  ;;  %1407 = vst.msk [vmem:[#allocation2 + $0x40] sm:$0xff] %vm1400_vm14, %v1394_v19 }
 0x255   : > { %1401 = vst.msk [vmem:[#allocation2 + $0x10] sm:$0xff] %vm1400_vm14, %v1388_v13  ;;  %v1391_v44 = vmax.f32 %v1379_v28, 0.0 }
 0x256   : > { %1410 = vst.msk [vmem:[#allocation2 + $0x58] sm:$0xff] %vm1400_vm14, %v1397_v43 }
 0x257   : > { %1404 = vst.msk [vmem:[#allocation2 + $0x28] sm:$0xff] %vm1400_vm14, %v1391_v44 }
 0x28c   : > { %v1197_v37 = vpop.f32.mrb[0].mxu0 }
 0x28d   : > { %v1338_v63 = vmul.f32 %v1321_v15, %v1197_v37  ;;  %v1199_v24 = vpop.f32.mrb[1].mxu0 }
 0x28e   : > { %v1339_v35 = vmul.f32 %v1321_v15, %v1199_v24  ;;  %v1201_v16 = vpop.f32.mrb[2].mxu0 }
 0x28f   : > { %v4720_v18 = vadd.f32 %v1357_v42, %v1338_v63  ;;  %v1341_v17 = vmul.f32 %v1326_v59, %v1201_v16  ;;  %v1203_v5 = vpop.f32.mrb[3].mxu0 }
 0x290   : > { %v4722_v20 = vadd.f32 %v1357_v42, %v1339_v35  ;;  %v1342_v40 = vmul.f32 %v1326_v59, %v1203_v5  ;;  %v2277_v5 = vshrl.u32 %v2276_v6, 7 }
 0x291   : > { %v1386_v25 = vmax.f32 %v4720_v18, 0.0  ;;  %v4725_v3 = vadd.f32 %v1362_v1, %v1341_v17 }
 0x292   : > { %v1387_v55 = vmax.f32 %v4722_v20, 0.0  ;;  %v4728_v58 = vadd.f32 %v1362_v1, %v1342_v40 }
 0x293   : > { %v1389_v41 = vmax.f32 %v4725_v3, 0.0 }
 0x294   : > { %v1390_v56 = vmax.f32 %v4728_v58, 0.0 }
 0x295   : > { %v1207_v22 = vpop.f32.mrb[4].mxu0 }
 0x296   : > { %v1344_v11 = vmul.f32 %v1331_v54, %v1207_v22  ;;  %v1209_v15 = vpop.f32.mrb[5].mxu0 }
 0x297   : > { %v1345_v29 = vmul.f32 %v1331_v54, %v1209_v15  ;;  %v1211_v60 = vpop.f32.mrb[6].mxu0 }
 0x298   : > { %v4732_v42 = vadd.f32 %v1367_v12, %v1344_v11  ;;  %v1347_v59 = vmul.f32 %v1336_v39, %v1211_v60  ;;  %v1213_v2 = vpop.f32.mrb[7].mxu0 }
 0x299   : > { %v4734_v30 = vadd.f32 %v1367_v12, %v1345_v29  ;;  %v1348_v31 = vmul.f32 %v1336_v39, %v1213_v2  ;;  %v2194_v29 = vpop.permute.xlu1 %2193 }
 0x29a   : > { %v1392_v7 = vmax.f32 %v4732_v42, 0.0  ;;  %v4737_v1 = vadd.f32 %v1372_v34, %v1347_v59 }
 0x29b   : > { %v1393_v62 = vmax.f32 %v4734_v30, 0.0  ;;  %v4740_v53 = vadd.f32 %v1372_v34, %v1348_v31 }
 0x29c   : > { %v5051_v49 = vmax.f32 %v4737_v1, 0.0 }
 0x29d   : > { %v5047_v50 = vmax.f32 %v4740_v53, 0.0 }
 0x2c8   : > { %v2940_v46 = vpop.f32.mrb[8].mxu0 }
 0x2c9   : > { %v2941_v54 = vpop.f32.mrb[9].mxu0 }
 0x2ca   : > { %v2942_v36 = vadd.f32 %v2941_v54, %v2940_v46  ;;  %v2943_v45 = vpop.f32.mrb[10].mxu0 }
 0x2cb   : > { %v2944_v8 = vpop.f32.mrb[11].mxu0 }
 0x2cc   : > { %v2945_v4 = vadd.f32 %v2944_v8, %v2943_v45  ;;  %v2199_v8 = vpop.permute.xlu0 %2198 }
 0x2d0   : > { %v2946_v33 = vpop.f32.mrb[12].mxu0 }
 0x2d1   : > { %v2947_v39 = vpop.f32.mrb[13].mxu0 }
 0x2d2   : > { %v2948_v57 = vadd.f32 %v2947_v39, %v2946_v33  ;;  %v2949_v12 = vpop.f32.mrb[14].mxu0 }
 0x2d3   : > { %v2950_v14 = vpop.f32.mrb[15].mxu0 }
 0x2d4   : > { %v2951_v61 = vadd.f32 %v2950_v14, %v2949_v12  ;;  %v2022_v0 = vpop.f32.mrb[12].mxu1  ;;  %v2278_v14 = vsub.s32 0, %v2277_v5 }
 0x2d5   : > { %v2164_v9 = vmul.f32 %v4704_v26, %v2022_v0  ;;  %v2024_v10 = vpop.f32.mrb[13].mxu1 }
 0x2d6   : > { %v2165_v34 = vmul.f32 %v4704_v26, %v2024_v10  ;;  %v2026_v38 = vpop.f32.mrb[14].mxu1 }
 0x2d7   : > { %v4747_v51 = vadd.f32 %v4708_v47, %v2164_v9  ;;  %v2167_v23 = vmul.f32 %v4706_v32, %v2026_v38  ;;  %v2028_v48 = vpop.f32.mrb[15].mxu1 }
 0x2d8   : > { %v4751_v19 = vadd.f32 %v4708_v47, %v2165_v34  ;;  %v2168_v13 = vmul.f32 %v4706_v32, %v2028_v48  ;;  %v2985_v28 = vpop.f32.mrb[16].mxu0 }
 0x2d9   : > { %v2213_v43 = vmax.f32 %v4747_v51, 0.0  ;;  %v4756_v44 = vadd.f32 %v4710_v21, %v2167_v23  ;;  %v2133_v37 = vadd.f32 %v2985_v28, %v2948_v57  ;;  %v2124_v63 = vpop.f32.mrb[17].mxu0  ;;  %v2282_v23 = vsub.s32 1, %v2277_v5 }
 0x2da   : > { %v2214_v24 = vmax.f32 %v4751_v19, 0.0  ;;  %v4760_v35 = vadd.f32 %v4710_v21, %v2168_v13  ;;  %v2125_v16 = vadd.f32 %v2942_v36, %v2124_v63  ;;  %v2986_v17 = vpop.f32.mrb[18].mxu0  ;;  %v2286_v63 = vsub.s32 2, %v2277_v5 }
 0x2db   : > { %v2216_v40 = vmax.f32 %v4756_v44, 0.0  ;;  %v2172_v22 = vmul.f32 %v4712_v52, %v2133_v37  ;;  %v2136_v11 = vadd.f32 %v2986_v17, %v2951_v61  ;;  %v2127_v15 = vpop.f32.mrb[19].mxu0 }
 0x2dc   : > { %v2217_v60 = vmax.f32 %v4760_v35, 0.0  ;;  %v2166_v59 = vmul.f32 %v4704_v26, %v2125_v16  ;;  %v2128_v2 = vadd.f32 %v2945_v4, %v2127_v15  ;;  %v2032_v31 = vpop.f32.mrb[16].mxu1  ;;  %v2262_v16 = vadd.f32 %v2213_v43, %v1386_v25 }
 0x2dd   : > { %v2209_v46 = vadd.f32 %v2194_v29, %v2172_v22  ;;  %v2175_v54 = vmul.f32 %v4714_v27, %v2136_v11  ;;  %v2170_v36 = vmul.f32 %v4712_v52, %v2032_v31  ;;  %v2034_v45 = vpop.f32.mrb[17].mxu1  ;;  %v2263_v17 = vadd.f32 %v2214_v24, %v1387_v55 }
 0x2de   : > { %v2203_v33 = vadd.f32 %v4708_v47, %v2166_v59  ;;  %v2169_v39 = vmul.f32 %v4706_v32, %v2128_v2  ;;  %v2171_v57 = vmul.f32 %v4712_v52, %v2034_v45  ;;  %v2036_v12 = vpop.f32.mrb[18].mxu1  ;;  %v2265_v15 = vadd.f32 %v2216_v40, %v1389_v41  ;;  %v4811_v2 = vld [vmem:[#allocation2 + $0x10] sm:$0xff] }
 0x2df   : > { %v2221_v61 = vmax.f32 %v2209_v46, 0.0  ;;  %v2212_v0 = vadd.f32 %v2199_v8, %v2175_v54  ;;  %v4771_v26 = vadd.f32 %v2194_v29, %v2170_v36  ;;  %v2173_v4 = vmul.f32 %v4714_v27, %v2036_v12  ;;  %v2038_v9 = vpop.f32.mrb[19].mxu1 }
 0x2e0   : > { %v2215_v10 = vmax.f32 %v2203_v33, 0.0  ;;  %v2206_v34 = vadd.f32 %v4710_v21, %v2169_v39  ;;  %v4775_v38 = vadd.f32 %v2194_v29, %v2171_v57  ;;  %v2174_v47 = vmul.f32 %v4714_v27, %v2038_v9  ;;  %v2274_v21 = vld [vmem:[%s5034_s2] sm:$0x7]  ;;  %v4827_v39 = vld [vmem:[#allocation2 + $0x58] sm:$0xff] }
 0x2e1   : > { %2234 = vst.msk [vmem:[#allocation2 + $0xa0] sm:$0xff] %vm1400_vm14, %v2221_v61  ;;  %v2224_v32 = vmax.f32 %v2212_v0, 0.0  ;;  %v5049_v52 = vmax.f32 %v4771_v26, 0.0  ;;  %v4780_v6 = vadd.f32 %v2199_v8, %v2173_v4  ;;  %v2279_v22 = vrot.slane %v2274_v21, %v2278_v14  ;;  %v4837_v61 = vld [vmem:[#allocation2 + $0x28] sm:$0xff] }
 0x2e2   : > { %2228 = vst.msk [vmem:[#allocation2 + $0x70] sm:$0xff] %vm1400_vm14, %v2215_v10  ;;  %v2218_v48 = vmax.f32 %v2206_v34, 0.0  ;;  %v5050_v13 = vmax.f32 %v4775_v38, 0.0  ;;  %v4784_v28 = vadd.f32 %v2199_v8, %v2174_v47  ;;  %v2283_v11 = vrot.slane %v2274_v21, %v2282_v23  ;;  %v4823_v8 = vld [vmem:[#allocation2 + $0x40] sm:$0xff] }
 0x2e3   : > { %2237 = vst.msk [vmem:[#allocation2 + $0xb8] sm:$0xff] %vm1400_vm14, %v2224_v32  ;;  %v5048_v27 = vmax.f32 %v4780_v6, 0.0  ;;  %v2266_v5 = vadd.f32 %v2217_v60, %v1390_v56  ;;  %v2287_v29 = vrot.slane %v2274_v21, %v2286_v63  ;;  %v2291_v46 = vmul.f32 %v2279_v22, %v2262_v16 }
 0x2e4   : > { %2231 = vst.msk [vmem:[#allocation2 + $0x88] sm:$0xff] %vm1400_vm14, %v2218_v48  ;;  %v5046_v37 = vmax.f32 %v4784_v28, 0.0  ;;  %v2292_v54 = vmul.f32 %v2283_v11, %v2263_v17  ;;  %v2268_v12 = vadd.f32 %v5049_v52, %v1392_v7  ;;  %v2294_v4 = vmul.f32 %v2279_v22, %v2265_v15 }
 0x2e5   : > { %v2271_v36 = vadd.f32 %v5048_v27, %v5051_v49  ;;  %v2295_v9 = vmul.f32 %v2283_v11, %v2266_v5  ;;  %v2269_v34 = vadd.f32 %v5050_v13, %v1393_v62 }
 0x2e6   : > { %v2272_v45 = vadd.f32 %v5046_v37, %v5047_v50  ;;  %v2303_v23 = vadd.f32 %v2292_v54, %v2291_v46  ;;  %v2297_v50 = vmul.f32 %v2279_v22, %v2268_v12 }
 0x2e7   : > { %v2300_v48 = vmul.f32 %v2279_v22, %v2271_v36  ;;  %v2308_v37 = vadd.f32 %v2295_v9, %v2294_v4  ;;  %v2298_v27 = vmul.f32 %v2283_v11, %v2269_v34  ;;  %v3788_v22 = vmov 0.0  }
 0x2e8   : > { %v4809_v59 = vld [vmem:[#allocation2 + $0xa0] sm:$0xff]  ;;  %v2301_v21 = vmul.f32 %v2283_v11, %v2272_v45  ;;  %2995 = vmatprep.mubr.msk.f32.mxu0 %vm3787_vm15, %v3788_v22 }
 0x2e9   : > { %v4813_v31 = vld [vmem:[#allocation2 + $0x70] sm:$0xff]  ;;  %v2270_v14 = vadd.f32 %v4809_v59, %v4823_v8  ;;  %v2313_v36 = vadd.f32 %v2298_v27, %v2297_v50  ;;  %v2402_v50 = vld [vmem:[%s5040_s8] sm:$0xff] }
 0x2ea   : > { %v2264_v33 = vadd.f32 %v4813_v31, %v4811_v2  ;;  %v4829_v57 = vld [vmem:[#allocation2 + $0xb8] sm:$0xff]  ;;  %v2318_v49 = vadd.f32 %v2301_v21, %v2300_v48  ;;  %v2397_v27 = vld [vmem:[%s5038_s6] sm:$0xff]  ;;  %v2403_v48 = vld [vmem:[%s5040_s8 + $0x8] sm:$0xff] }
 0x2eb   : > { %v4839_v0 = vld [vmem:[#allocation2 + $0x88] sm:$0xff]  ;;  %v2273_v10 = vadd.f32 %v4829_v57, %v4827_v39  ;;  %v2299_v15 = vmul.f32 %v2287_v29, %v2270_v14 }
 0x2ec   : > { %v2293_v47 = vmul.f32 %v2287_v29, %v2264_v33  ;;  %v2267_v32 = vadd.f32 %v4839_v0, %v4837_v61  ;;  %v2877_v21 = vld [vmem:[%s5040_s8 + $0x28] sm:$0xff] }
 0x2ed   : > { %v2302_v63 = vmul.f32 %v2287_v29, %v2273_v10  ;;  %v2314_v46 = vsel %vm1400_vm14, %v2299_v15, 0.0  ;;  %v2399_v10 = vld [vmem:[%s5039_s7] sm:$0xff]  ;;  %v2879_v15 = vld [vmem:[%s5040_s8 + $0x38] sm:$0xff] }
 0x2ee   : > { %v2304_v16 = vsel %vm1400_vm14, %v2293_v47, 0.0  ;;  %v2296_v17 = vmul.f32 %v2287_v29, %v2267_v32  ;;  %v2315_v45 = vadd.f32 %v2314_v46, %v2313_v36  ;;  %v3786_v29 = vmov 0.0|0.0   ;;  %v2406_v46 = vld [vmem:[%s5041_s9] sm:$0xff] }
 0x2ef   : > { %v2305_v5 = vadd.f32 %v2304_v16, %v2303_v23  ;;  %v2319_v13 = vsel %vm1400_vm14, %v2302_v63, 0.0  ;;  %3014 = vmatprep.subr.bf16.mxu0 %v3786_v29  ;;  %v2404_v63 = vld [vmem:[%s5040_s8 + $0x10] sm:$0xff] }
 0x2f0   : > { %v2309_v52 = vsel %vm1400_vm14, %v2296_v17, 0.0  ;;  %v2320_v54 = vadd.f32 %v2319_v13, %v2318_v49  ;;  %v2323_v49 = vld [vmem:[%s5037_s5] sm:$0xff]  ;;  %v2878_v16 = vld [vmem:[%s5040_s8 + $0x30] sm:$0xff]  ;;  %v2405_v17 = vld [vmem:[%s5040_s8 + $0x18] sm:$0xff] }
 0x2f1   : > { %2306 = vadd.xlane.f32.xlu1 %v2305_v5  ;;  %v2310_v33 = vadd.f32 %v2309_v52, %v2308_v37  ;;  %v2876_v13 = vld [vmem:[%s5040_s8 + $0x20] sm:$0xff]  ;;  %v2407_v5 = vld [vmem:[%s5041_s9 + $0x8] sm:$0xff] }
 0x2f2   : > { %3008 = vmatprep.mubr.msk.f32.mxu1 %vm2410_vm0, %v2876_v13  ;;  %v2882_v13 = vld [vmem:[%s5041_s9 + $0x30] sm:$0xff] }
 0x2f3   : > { %2311 = vadd.xlane.f32.xlu0 %v2310_v33  ;;  %v2881_v33 = vld [vmem:[%s5041_s9 + $0x28] sm:$0xff] }
 0x2f5   : > { %2321 = vadd.xlane.f32.xlu1 %v2320_v54  ;;  %v2880_v54 = vld [vmem:[%s5041_s9 + $0x20] sm:$0xff] }
 0x2f7   : > { %2316 = vadd.xlane.f32.xlu0 %v2315_v45 }
 0x37e   : > { %v2307_v11 = vpop.xlane.xlu1 %2306 }
 0x380   : > { %v2312_v12 = vpop.xlane.xlu0 %2311 }
 0x381   : > { %v3015_v14 = vpack.c.bf16 %v2312_v12, %v2307_v11 }
 0x382   : > { %v2322_v4 = vpop.xlane.xlu1 %2321 }
 0x383   : > { %3016 = vmatpush3.bf16.msra.mxu0 %v3015_v14 }
 0x384   : > { %v2317_v52 = vpop.xlane.xlu0 %2316  ;;  %3017 = vmatprep.subr.bf16.mxu0 %v3786_v29 }
 0x385   : > { %v3018_v37 = vpack.c.bf16 %v2322_v4, %v2317_v52  ;;  %v2409_v52 = vld [vmem:[%s5041_s9 + $0x18] sm:$0xff] }
 0x387   : > { %3019 = vmatpush3.bf16.msra.mxu0 %v3018_v37  ;;  %v2883_v37 = vld [vmem:[%s5041_s9 + $0x38] sm:$0xff] }
 0x38a   : > { %2996 = vmatmul.mubr.msk.f32.vlgmr.msra.gmra.mrb[20].mxu0 %vm1103_vm8, %v2323_v49 }
 0x38b   : > { %3000 = vmatprep.mubr.msk.f32.mxu0 %vm2410_vm0, %v2402_v50  ;;  %v2408_v50 = vld [vmem:[%s5041_s9 + $0x10] sm:$0xff] }
 0x45d   : > { %v2393_v9 = vpop.f32.mrb[20].mxu0 }
 0x45e   : > { %v2398_v34 = vmul.f32 %v2397_v27, %v2393_v9  ;;  %v2997_v47 = vpop.f32.mrb[21].mxu0 }
 0x460   : > { %v2400_v32 = vadd.f32 %v2399_v10, %v2398_v34 }
 0x462   : > { %v2401_v23 = vmax.f32 %v2400_v32, 0.0 }
 0x464   : > { %2998 = vmatprep.subr.mxu0 %v2401_v23  ;;  %3006 = vmatprep.subr.mxu1 %v2401_v23 }
 0x465   : > { %2999 = vmatpush3.msra.mxu0 %v2401_v23  ;;  %3007 = vmatpush3.msra.mxu1 %v2401_v23 }
 0x466   : > { %3001 = vmatmul.mubr.msk.f32.vlgmr.msra.gmra.mrb[22].mxu0 %vm2410_vm0, %v2403_v48  ;;  %3009 = vmatmul.mubr.msk.f32.vlgmr.msra.gmra.mrb[20].mxu1 %vm2410_vm0, %v2877_v21 }
 0x467   : > { %3003 = vmatprep.mubr.msk.f32.mxu0 %vm2410_vm0, %v2404_v63  ;;  %3011 = vmatprep.mubr.msk.f32.mxu1 %vm2410_vm0, %v2878_v16 }
 0x46a   : > { %3004 = vmatmul.mubr.msk.f32.gmra.mrb[24].mxu0 %vm2410_vm0, %v2405_v17  ;;  %3012 = vmatmul.mubr.msk.f32.gmra.mrb[22].mxu1 %vm2410_vm0, %v2879_v15 }
 0x539   : > { %v3002_v36 = vpop.f32.mrb[22].mxu0  ;;  %v3010_v45 = vpop.f32.mrb[20].mxu1 }
 0x53a   : > { %v2495_v29 = vadd.f32 %v3002_v36, %v2407_v5  ;;  %v2602_v22 = vadd.f32 %v3010_v45, %v2881_v33  ;;  %v2489_v11 = vpop.f32.mrb[23].mxu0  ;;  %v2596_v12 = vpop.f32.mrb[21].mxu1 }
 0x53b   : > { %v2490_v14 = vadd.f32 %v2489_v11, %v2406_v46  ;;  %v2597_v4 = vadd.f32 %v2880_v54, %v2596_v12 }
 0x53c   : > { %v2616_v49 = vmax.f32 %v2495_v29, %v2602_v22 }
 0x53d   : > { %v2615_v27 = vmax.f32 %v2490_v14, %v2597_v4  ;;  %v3005_v9 = vpop.f32.mrb[24].mxu0  ;;  %v3013_v10 = vpop.f32.mrb[22].mxu1 }
 0x53e   : > { %v2620_v34 = vsub.f32 %v2495_v29, %v2616_v49  ;;  %v2632_v47 = vsub.f32 %v2602_v22, %v2616_v49  ;;  %v2505_v32 = vadd.f32 %v3005_v9, %v2409_v52  ;;  %v2612_v23 = vadd.f32 %v3013_v10, %v2883_v37  ;;  %v2499_v48 = vpop.f32.mrb[25].mxu0  ;;  %v2606_v21 = vpop.f32.mrb[23].mxu1 }
 0x53f   : > { %v2619_v63 = vsub.f32 %v2490_v14, %v2615_v27  ;;  %v2631_v16 = vsub.f32 %v2597_v4, %v2615_v27  ;;  %v2500_v17 = vadd.f32 %v2499_v48, %v2408_v50  ;;  %v2607_v15 = vadd.f32 %v2882_v13, %v2606_v21 }
 0x540   : > { %v2625_v5 = vmul.f32 1.442695, %v2620_v34  ;;  %v2637_v33 = vmul.f32 1.442695, %v2632_v47  ;;  %v2618_v46 = vmax.f32 %v2505_v32, %v2612_v23 }
 0x541   : > { %v2623_v54 = vmul.f32 1.442695, %v2619_v63  ;;  %v2635_v36 = vmul.f32 1.442695, %v2631_v16  ;;  %v2617_v45 = vmax.f32 %v2500_v17, %v2607_v15 }
 0x542   : > { %3637 = vpow2.f32 %v2625_v5  ;;  %v2622_v11 = vsub.f32 %v2505_v32, %v2618_v46  ;;  %v2634_v12 = vsub.f32 %v2612_v23, %v2618_v46 }
 0x543   : > { %3639 = vpow2.f32 %v2637_v33  ;;  %v2621_v29 = vsub.f32 %v2500_v17, %v2617_v45  ;;  %v2633_v22 = vsub.f32 %v2607_v15, %v2617_v45 }
 0x544   : > { %3641 = vpow2.f32 %v2623_v54  ;;  %v2629_v52 = vmul.f32 1.442695, %v2622_v11  ;;  %v2641_v37 = vmul.f32 1.442695, %v2634_v12 }
 0x545   : > { %3643 = vpow2.f32 %v2635_v36  ;;  %v2627_v14 = vmul.f32 1.442695, %v2621_v29  ;;  %v2639_v4 = vmul.f32 1.442695, %v2633_v22 }
 0x546   : > { %3645 = vpow2.f32 %v2629_v52 }
 0x547   : > { %3647 = vpow2.f32 %v2641_v37 }
 0x548   : > { %3649 = vpow2.f32 %v2627_v14 }
 0x549   : > { %3651 = vpow2.f32 %v2639_v4 }
 0x54c   : > { %v3638_v49 = vpop.eup %3637 }
 0x54d   : > { %v3640_v50 = vpop.eup %3639 }
 0x54e   : > { %v3642_v13 = vpop.eup %3641  ;;  %v2644_v27 = vadd.f32 %v3640_v50, %v3638_v49 }
 0x54f   : > { %v3644_v9 = vpop.eup %3643 }
 0x550   : > { %v3646_v10 = vpop.eup %3645  ;;  %3653 = vrcp.f32 %v2644_v27  ;;  %v2643_v34 = vadd.f32 %v3644_v9, %v3642_v13 }
 0x551   : > { %v3648_v47 = vpop.eup %3647 }
 0x552   : > { %v3650_v32 = vpop.eup %3649  ;;  %3655 = vrcp.f32 %v2643_v34  ;;  %v2646_v23 = vadd.f32 %v3648_v47, %v3646_v10 }
 0x553   : > { %v3652_v48 = vpop.eup %3651 }
 0x554   : > { %3657 = vrcp.f32 %v2646_v23  ;;  %v2645_v21 = vadd.f32 %v3652_v48, %v3650_v32 }
 0x556   : > { %3659 = vrcp.f32 %v2645_v21 }
 0x55a   : > { %v3654_v63 = vpop.eup %3653 }
 0x55b   : > { %v2688_v16 = vmul.f32 %v3654_v63, %v3640_v50  ;;  %v2652_v17 = vmul.f32 %v3654_v63, %v3638_v49 }
 0x55c   : > { %v3656_v15 = vpop.eup %3655 }
 0x55d   : > { %2698 = vperm.xlu0 %3619, %v2688_v16   ;;  %2662 = vperm.xlu1 %3620, %v2652_v17   ;;  %v2687_v5 = vmul.f32 %v3656_v15, %v3644_v9  ;;  %v2651_v33 = vmul.f32 %v3656_v15, %v3642_v13 }
 0x55e   : > { %v3658_v46 = vpop.eup %3657 }
 0x55f   : > { %v2654_v54 = vmul.f32 %v3658_v46, %v3646_v10  ;;  %v2690_v36 = vmul.f32 %v3658_v46, %v3648_v47  ;;  %v5061_v47 = vmax.f32 %v4775_v38, 0.0 }
 0x560   : > { %v3660_v45 = vpop.eup %3659 }
 0x561   : > { %2693 = vperm.xlu1 %3620, %v2687_v5   ;;  %2657 = vperm.xlu0 %3619, %v2651_v33   ;;  %v2653_v11 = vmul.f32 %v3660_v45, %v3650_v32  ;;  %v2689_v12 = vmul.f32 %v3660_v45, %v3652_v48 }
 0x565   : > { %2667 = vperm.xlu1 %3620, %v2653_v11   ;;  %2672 = vperm.xlu0 %3619, %v2654_v54  }
 0x569   : > { %2703 = vperm.xlu1 %3620, %v2689_v12   ;;  %2708 = vperm.xlu0 %3619, %v2690_v36  }
 0x5dc   : > { %v2699_v29 = vpop.permute.xlu0 %2698  ;;  %v2663_v22 = vpop.permute.xlu1 %2662 }
 0x5dd   : > { %v2714_v52 = vmul.f32 %v2699_v29, %v2216_v40  ;;  %v2715_v37 = vmul.f32 %v2699_v29, %v2217_v60  ;;  %v2716_v14 = vmul.f32 %v2699_v29, %v4839_v0  ;;  %v2678_v4 = vmul.f32 %v2663_v22, %v1389_v41 }
 0x5de   : > { %v2679_v49 = vmul.f32 %v2663_v22, %v1390_v56  ;;  %v2680_v50 = vmul.f32 %v2663_v22, %v4837_v61  ;;  %v5060_v61 = vmax.f32 %v4771_v26, 0.0  ;;  %v5064_v26 = vmax.f32 %v4784_v28, 0.0 }
 0x5df   : > { %v2726_v13 = vadd.f32 %v2714_v52, %v2678_v4 }
 0x5e0   : > { %v2727_v27 = vadd.f32 %v2715_v37, %v2679_v49  ;;  %v2728_v9 = vadd.f32 %v2716_v14, %v2680_v50  ;;  %v2694_v10 = vpop.permute.xlu1 %2693  ;;  %v2658_v34 = vpop.permute.xlu0 %2657 }
 0x5e1   : > { %2738 = vst [vmem:[%s4932_s30 + $0x18] sm:$0xff] %v2726_v13  ;;  %v2711_v3 = vmul.f32 %v2694_v10, %v2213_v43  ;;  %v2712_v58 = vmul.f32 %v2694_v10, %v2214_v24  ;;  %v2713_v41 = vmul.f32 %v2694_v10, %v4813_v31  ;;  %v2675_v56 = vmul.f32 %v2658_v34, %v1386_v25 }
 0x5e2   : > { %2739 = vst [vmem:[%s4932_s30 + $0x20] sm:$0xff] %v2727_v27  ;;  %2740 = vst.msk [vmem:[%s4932_s30 + $0x28] sm:$0xff] %vm1400_vm14, %v2728_v9  ;;  %v2676_v44 = vmul.f32 %v2658_v34, %v1387_v55  ;;  %v2677_v35 = vmul.f32 %v2658_v34, %v4811_v2  ;;  %v5059_v55 = vmax.f32 %v4737_v1, 0.0  ;;  %v5063_v1 = vmax.f32 %v4740_v53, 0.0 }
 0x5e3   : > { %v2723_v51 = vadd.f32 %v2711_v3, %v2675_v56 }
 0x5e4   : > { %v2724_v43 = vadd.f32 %v2712_v58, %v2676_v44  ;;  %v2725_v40 = vadd.f32 %v2713_v41, %v2677_v35  ;;  %v2668_v19 = vpop.permute.xlu1 %2667  ;;  %v2673_v24 = vpop.permute.xlu0 %2672 }
 0x5e5   : > { %2735 = vst [vmem:[%s4932_s30] sm:$0xff] %v2723_v51  ;;  %v2681_v18 = vmul.f32 %v2668_v19, %v1392_v7  ;;  %v2682_v20 = vmul.f32 %v2668_v19, %v1393_v62  ;;  %v2683_v25 = vmul.f32 %v2668_v19, %v4823_v8  ;;  %v2684_v60 = vmul.f32 %v2673_v24, %v5059_v55 }
 0x5e6   : > { %2736 = vst [vmem:[%s4932_s30 + $0x8] sm:$0xff] %v2724_v43  ;;  %2737 = vst.msk [vmem:[%s4932_s30 + $0x10] sm:$0xff] %vm1400_vm14, %v2725_v40  ;;  %v5062_v7 = vmax.f32 %v4780_v6, 0.0  ;;  %v2685_v8 = vmul.f32 %v2673_v24, %v5063_v1  ;;  %v2686_v32 = vmul.f32 %v2673_v24, %v4827_v39 }
 0x5e8   : > { %v2704_v2 = vpop.permute.xlu1 %2703  ;;  %v2709_v31 = vpop.permute.xlu0 %2708 }
 0x5e9   : > { %v2717_v0 = vmul.f32 %v2704_v2, %v5060_v61  ;;  %v2718_v42 = vmul.f32 %v2704_v2, %v5061_v47  ;;  %v2719_v30 = vmul.f32 %v2704_v2, %v4809_v59  ;;  %v2720_v62 = vmul.f32 %v2709_v31, %v5062_v7 }
 0x5ea   : > { %v2721_v38 = vmul.f32 %v2709_v31, %v5064_v26  ;;  %v2722_v23 = vmul.f32 %v2709_v31, %v4829_v57 }
 0x5eb   : > { %v2729_v48 = vadd.f32 %v2717_v0, %v2681_v18  ;;  %v2730_v59 = vadd.f32 %v2718_v42, %v2682_v20  ;;  %v2731_v6 = vadd.f32 %v2719_v30, %v2683_v25  ;;  %v2732_v21 = vadd.f32 %v2720_v62, %v2684_v60 }
 0x5ec   : > { %v2733_v53 = vadd.f32 %v2721_v38, %v2685_v8  ;;  %v2734_v63 = vadd.f32 %v2722_v23, %v2686_v32 }
 0x5ed   : > { %2741 = vst [vmem:[%s4932_s30 + $0x30] sm:$0xff] %v2729_v48  ;;  %2742 = vst [vmem:[%s4932_s30 + $0x38] sm:$0xff] %v2730_v59 }
 0x5ee   : > { %2743 = vst.msk [vmem:[%s4932_s30 + $0x40] sm:$0xff] %vm1400_vm14, %v2731_v6  ;;  %2744 = vst [vmem:[%s4932_s30 + $0x48] sm:$0xff] %v2732_v21 }
 0x5ef   : > { %2745 = vst [vmem:[%s4932_s30 + $0x50] sm:$0xff] %v2733_v53  ;;  %2746 = vst.msk [vmem:[%s4932_s30 + $0x58] sm:$0xff] %vm1400_vm14, %v2734_v63 }
 0x5f0   : > { %3714 = shalt.err (!%p3711_p7)
}
 0x5f1   : > { %s3715_s27 = scalar_lea.hbm %s4979_s11, 1536  ;;  %s3719_s17 = scalar_lea.hbm %s5042_s10, 3072 }
 0x5f2   : > { %p3716_p8 = scmp.ne.s32.totalorder %s4979_s11, %s3715_s27  ;;  %p3720_p1 = scmp.lt.u32.totalorder %s4979_s11, %s5042_s10 }
 0x5f3   : > { %p3721_p0 = scmp.lt.u32.totalorder %s3719_s17, %s3715_s27  ;;  %p3723_p6 = scmp.lt.u32.totalorder %s3715_s27, %s4979_s11 }
 0x5f4   : > { %p3717_p11 = pnand %p3716_p8, %p5065_p9 }
 0x5f5   : > { %p3722_p5 = por %p3721_p0, %p3720_p1 }
 0x5f6   : > { %p3718_p13 = pneg %p3717_p11 }
 0x5f7   : > { %p3724_p10 = por %p3723_p6, %p3722_p5 }
 0x5f9   : > { %p3725_p12 = pnand %p3724_p10, %p3718_p13 }
 0x5fb   : > { %3728 = shalt.err (!%p3725_p12)
}
 0x5fc   : > { %s3790_s21 = smov 384   ;;  %s3791_s25 = smov 24  }
 0x5fd   : > { %3042 = dma.vmem_to_hbm [thread:$0]  (%p5065_p9), %s4974_s26, 1536, %s4979_s11, %s4991_s20, %s3790_s21, %s3790_s21, %s3791_s25  }
 0x5fe PF: > { %p3054_p2 = scmp.ge.s32.totalorder %s3767_s16, 2  ;;  %s2776_s29 = sand.u32 1, %s3755_s13  }
 0x5ff   : > { %p5066_p3 = scmp.ne.s32.totalorder %s5053_s24, 0  ;;  %s2777_s27 = scalar_lea.sflag [#allocation5], %s2776_s29 }
 0x601   : > { %p3049_p4 = pnand %p3054_p2, %p5066_p3 }
 0x603   : > { %3750 = dma.done.wait (!%p3049_p4), %s2777_s27, 1536  }
 0x604   : > { %3752 = vsyncadd (!%p3049_p4), %s2777_s27, 4294965760  ;;  %p21_p7 = scmp.ge.s32.totalorder %s3872_s19, 4   ;;  %s5067_s13 = smov %s3759_s14 }
 0x605   : > { %s5068_s14 = smov %s3763_s15  ;;  %s5069_s15 = smov %s3883_s22 }
 0x606   : > { %s5070_s16 = smov %s3872_s19  ;;  %23 = sbr.rel (!%p21_p7) target bundleno = 4 (0x4), region = 106 }
 0x60d   :  { %2782 = vsyncpa [#allocation4], 1 }
 0x60e   :  { %2784 = vsyncpa [#allocation4 + $0x1], 1 }
 0x60f   :  { %2785 = vsyncpa [#allocation5], 1 }
 0x610   :  { %2787 = vsyncpa [#allocation5 + $0x1], 1 }

</bundles_post_ra>
